<compile_context>
chip_gen: v5e
topology: v5e:2x2
jax: 0.10.0
libtpu: 0.0.40
codegen_flags: <defaults>
</compile_context>

<pallas_src>
import functools

import jax
import jax.numpy as jnp
from jax.experimental import pallas as pl
from jax.experimental.pallas import tpu as pltpu

OUT_PAD = 128  # lane-dense padding of the final Linear(32, 1) output column


def combined_head_kernel(hs_ref, num_ref,
                         w1_ref, b1_ref, w2_ref, b2_ref,
                         w3a_ref, w3b_ref, b3_ref,
                         w4_ref, b4_ref, w5_ref, b5_ref,
                         o_ref):
    # (tb, S, H) -> (tb, H): unmasked mean over the sequence axis
    # (matches last_hidden_state.mean(dim=1)).
    pooled = jnp.mean(hs_ref[...].astype(jnp.float32), axis=1)

    # Numeric branch: relu(fc2(relu(fc1(numeric_data)))).
    x = jnp.dot(num_ref[...], w1_ref[...], preferred_element_type=jnp.float32)
    x = jnp.maximum(x + b1_ref[...], 0.0)
    x = jnp.dot(x, w2_ref[...], preferred_element_type=jnp.float32)
    x = jnp.maximum(x + b2_ref[...], 0.0)

    # fc3 over cat([pooled, x]) without materializing the concat:
    #   cat([p, x]) @ W3 == p @ W3[:H] + x @ W3[H:]
    z = (jnp.dot(pooled, w3a_ref[...], preferred_element_type=jnp.float32)
         + jnp.dot(x, w3b_ref[...], preferred_element_type=jnp.float32)
         + b3_ref[...])
    z = jnp.maximum(z, 0.0)

    # fc4 + relu.
    z = jnp.dot(z, w4_ref[...], preferred_element_type=jnp.float32)
    z = jnp.maximum(z + b4_ref[...], 0.0)

    # Final Linear(32, 1), columns zero-padded to OUT_PAD lanes for a dense store.
    y = jnp.dot(z, w5_ref[...], preferred_element_type=jnp.float32) + b5_ref[...]
    o_ref[...] = y.astype(o_ref.dtype)


def _pick_batch_tile(batch):
    # Prefer >= 2 grid steps (pipelining + v7x dual-TC sharding); rows multiple of 8.
    for t in (256, 128, 64, 32, 16, 8):
        if batch % t == 0 and batch // t >= 2:
            return t
    return batch


def _weight_spec(shape, single_buffer):
    index_map = lambda i, _n=len(shape): (0,) * _n
    if single_buffer and hasattr(pl, "Buffered"):
        # Grid-invariant operand: one VMEM buffer is enough (halves its footprint).
        return pl.BlockSpec(shape, index_map, pipeline_mode=pl.Buffered(1))
    return pl.BlockSpec(shape, index_map)


def _forward(hs, numeric, params, *, batch_tile, single_buffer_weights):
    w1, b1, w2, b2, w3a, w3b, b3, w4, b4, w5, b5 = params
    B, S, H = hs.shape
    Dn = numeric.shape[1]
    tb = batch_tile or _pick_batch_tile(B)
    assert B % tb == 0, f"batch {B} must be divisible by batch tile {tb}"
    # TODO(synk): ragged batches need pl.cdiv + masking (or batch padding in the wrapper).

    d1 = w1.shape[1]   # 64
    d2 = w2.shape[1]   # 32
    d3 = w3a.shape[1]  # 64
    d4 = w4.shape[1]   # 32

    # Zero-pad the (32, 1) output projection to OUT_PAD lanes (padded columns are
    # exactly zero, so slicing [:, :1] recovers the exact result).
    w5p = jnp.zeros((d4, OUT_PAD), w5.dtype).at[:, :w5.shape[1]].set(w5)
    b5p = jnp.zeros((1, OUT_PAD), b5.dtype).at[0, :b5.shape[0]].set(b5)

    # 2-D biases so they broadcast over the batch tile in-kernel.
    b1_2d = b1.reshape(1, d1)
    b2_2d = b2.reshape(1, d2)
    b3_2d = b3.reshape(1, d3)
    b4_2d = b4.reshape(1, d4)

    grid = (B // tb,)

    itemsize = jnp.dtype(jnp.float32).itemsize
    stream_bytes = 2 * (tb * S * H + tb * Dn + tb * OUT_PAD) * itemsize  # double-buffered
    weight_bytes = sum(int(a.size) for a in
                       (w1, b1, w2, b2, w3a, w3b, b3, w4, b4, w5p, b5p)) * itemsize
    # Explicit VMEM budget (lifts the 32 MiB default scoped limit if needed, stays well
    # under v7x's 64 MiB physical VMEM).
    vmem_limit = int(min(max(2 * (stream_bytes + weight_bytes), 16 * 2**20), 48 * 2**20))

    flops_per_row = 2 * (Dn * d1 + d1 * d2 + H * d3 + d2 * d3 + d3 * d4 + d4 * OUT_PAD) + S * H
    cost = pl.CostEstimate(
        flops=int(B * flops_per_row),
        transcendentals=0,
        bytes_accessed=int((hs.size + numeric.size + B * OUT_PAD) * itemsize + weight_bytes),
    )

    ws = functools.partial(_weight_spec, single_buffer=single_buffer_weights)

    out = pl.pallas_call(
        combined_head_kernel,
        out_shape=jax.ShapeDtypeStruct((B, OUT_PAD), hs.dtype),
        grid_spec=pltpu.PrefetchScalarGridSpec(
            num_scalar_prefetch=0,
            grid=grid,
            in_specs=[
                pl.BlockSpec((tb, S, H), lambda i: (i, 0, 0)),  # hidden states (streamed)
                pl.BlockSpec((tb, Dn), lambda i: (i, 0)),       # numeric data (streamed)
                ws((Dn, d1)), ws((1, d1)),                      # fc1
                ws((d1, d2)), ws((1, d2)),                      # fc2
                ws((H, d3)), ws((d2, d3)), ws((1, d3)),         # fc3 (row-split for concat-free)
                ws((d3, d4)), ws((1, d4)),                      # fc4
                ws((d4, OUT_PAD)), ws((1, OUT_PAD)),            # output (lane-padded)
            ],
            out_specs=pl.BlockSpec((tb, OUT_PAD), lambda i: (i, 0)),
        ),
        compiler_params=pltpu.CompilerParams(
            dimension_semantics=("parallel",),
            vmem_limit_bytes=vmem_limit,
        ),
        cost_estimate=cost,
    )(hs, numeric, w1, b1_2d, w2, b2_2d, w3a, w3b, b3_2d, w4, b4_2d, w5p, b5p)

    return out[:, :1]


def combined_model_forward(last_hidden_state, numeric_data, params, *, batch_tile=None):
    """Fused mean-pool + MLP head of CombinedModel. Returns (B, 1)."""
    try:
        return _forward(last_hidden_state, numeric_data, params,
                        batch_tile=batch_tile, single_buffer_weights=True)
    except Exception:
        # pipeline_mode=pl.Buffered(1) not supported by this JAX/libtpu build:
        # fall back to default double-buffered weight specs (correctness unchanged).
        return _forward(last_hidden_state, numeric_data, params,
                        batch_tile=batch_tile, single_buffer_weights=False)


def init_params(key, numeric_input_dim, hidden_size, dtype=jnp.float32):
    """nn.Linear-style U(-1/sqrt(fan_in), 1/sqrt(fan_in)) init; weights stored
    pre-transposed as (in, out) so the kernel computes x @ W."""
    def linear(k, fan_in, fan_out):
        kw, kb = jax.random.split(k)
        bound = float(fan_in) ** -0.5
        w = jax.random.uniform(kw, (fan_in, fan_out), dtype, minval=-bound, maxval=bound)
        b = jax.random.uniform(kb, (fan_out,), dtype, minval=-bound, maxval=bound)
        return w, b

    k1, k2, k3, k4, k5 = jax.random.split(key, 5)
    w1, b1 = linear(k1, numeric_input_dim, 64)
    w2, b2 = linear(k2, 64, 32)
    w3, b3 = linear(k3, hidden_size + 32, 64)
    w3a, w3b = w3[:hidden_size], w3[hidden_size:]
    w4, b4 = linear(k4, 64, 32)
    w5, b5 = linear(k5, 32, 1)
    return (w1, b1, w2, b2, w3a, w3b, b3, w4, b4, w5, b5)


def combined_model_ref(last_hidden_state, numeric_data, params):
    w1, b1, w2, b2, w3a, w3b, b3, w4, b4, w5, b5 = params
    pooled = last_hidden_state.mean(axis=1)
    x = jax.nn.relu(numeric_data @ w1 + b1)
    x = jax.nn.relu(x @ w2 + b2)
    combined = jnp.concatenate([pooled, x], axis=1)
    w3 = jnp.concatenate([w3a, w3b], axis=0)
    z = jax.nn.relu(combined @ w3 + b3)
    z = jax.nn.relu(z @ w4 + b4)
    return z @ w5 + b5


if __name__ == "__main__":
    key = jax.random.PRNGKey(0)
    k_hs, k_num, k_p = jax.random.split(key, 3)

    batch, seq, hidden, numeric_dim = 64, 8, 128, 16

    # Stand-in for the frozen transformer's last_hidden_state (see TODO above).
    last_hidden_state = jax.random.normal(k_hs, (batch, seq, hidden), jnp.float32)
    numeric_data = jax.random.normal(k_num, (batch, numeric_dim), jnp.float32)
    params = init_params(k_p, numeric_dim, hidden)

    out = combined_model_forward(last_hidden_state, numeric_data, params)
    out = jax.block_until_ready(out)

    ref = combined_model_ref(last_hidden_state, numeric_data, params)
    assert out.shape == (batch, 1)
    assert jnp.allclose(out, ref, atol=1e-4, rtol=1e-4), "mismatch vs reference"

    print("KERNEL_OK")
</pallas_src>

<mosaic_0001>
module attributes {stable_mosaic.version = 11 : i64} {
  func.func @combined_head_kernel(%arg0: i32, %arg1: memref<32x8x128xf32, #tpu.memory_space<vmem>>, %arg2: memref<32x16xf32, #tpu.memory_space<vmem>>, %arg3: memref<16x64xf32, #tpu.memory_space<vmem>>, %arg4: memref<1x64xf32, #tpu.memory_space<vmem>>, %arg5: memref<64x32xf32, #tpu.memory_space<vmem>>, %arg6: memref<1x32xf32, #tpu.memory_space<vmem>>, %arg7: memref<128x64xf32, #tpu.memory_space<vmem>>, %arg8: memref<32x64xf32, #tpu.memory_space<vmem>>, %arg9: memref<1x64xf32, #tpu.memory_space<vmem>>, %arg10: memref<64x32xf32, #tpu.memory_space<vmem>>, %arg11: memref<1x32xf32, #tpu.memory_space<vmem>>, %arg12: memref<32x128xf32, #tpu.memory_space<vmem>>, %arg13: memref<1x128xf32, #tpu.memory_space<vmem>>, %arg14: memref<32x128xf32, #tpu.memory_space<vmem>>) attributes {dimension_semantics = [#tpu.dimension_semantics<parallel>], iteration_bounds = array<i64: 2>, scalar_prefetch = 0 : i64, scratch_operands = 0 : i64, tpu.core_type = #tpu.core_type<tc>, window_params = [{transform_indices = @transform_0, window_bounds = array<i64: 32, 8, 128>}, {transform_indices = @transform_1, window_bounds = array<i64: 32, 16>}, {pipeline_mode = #tpu.pipeline_mode<synchronous>, transform_indices = @transform_2, window_bounds = array<i64: 16, 64>}, {pipeline_mode = #tpu.pipeline_mode<synchronous>, transform_indices = @transform_3, window_bounds = array<i64: 1, 64>}, {pipeline_mode = #tpu.pipeline_mode<synchronous>, transform_indices = @transform_4, window_bounds = array<i64: 64, 32>}, {pipeline_mode = #tpu.pipeline_mode<synchronous>, transform_indices = @transform_5, window_bounds = array<i64: 1, 32>}, {pipeline_mode = #tpu.pipeline_mode<synchronous>, transform_indices = @transform_6, window_bounds = array<i64: 128, 64>}, {pipeline_mode = #tpu.pipeline_mode<synchronous>, transform_indices = @transform_7, window_bounds = array<i64: 32, 64>}, {pipeline_mode = #tpu.pipeline_mode<synchronous>, transform_indices = @transform_8, window_bounds = array<i64: 1, 64>}, {pipeline_mode = #tpu.pipeline_mode<synchronous>, transform_indices = @transform_9, window_bounds = array<i64: 64, 32>}, {pipeline_mode = #tpu.pipeline_mode<synchronous>, transform_indices = @transform_10, window_bounds = array<i64: 1, 32>}, {pipeline_mode = #tpu.pipeline_mode<synchronous>, transform_indices = @transform_11, window_bounds = array<i64: 32, 128>}, {pipeline_mode = #tpu.pipeline_mode<synchronous>, transform_indices = @transform_12, window_bounds = array<i64: 1, 128>}, {transform_indices = @transform_13, window_bounds = array<i64: 32, 128>}]} {
    %c0 = arith.constant 0 : index
    %c0_0 = arith.constant 0 : index
    %c0_1 = arith.constant 0 : index
    %0 = vector.load %arg1[%c0, %c0_0, %c0_1] : memref<32x8x128xf32, #tpu.memory_space<vmem>>, vector<32x8x128xf32>
    %cst = arith.constant dense<0.000000e+00> : vector<32x128xf32>
    %1 = vector.multi_reduction <add>, %0, %cst [1] : vector<32x8x128xf32> to vector<32x128xf32>
    %cst_2 = arith.constant 8.000000e+00 : f32
    %2 = vector.broadcast %cst_2 : f32 to vector<32x128xf32>
    %3 = arith.divf %1, %2 : vector<32x128xf32>
    %c0_3 = arith.constant 0 : index
    %c0_4 = arith.constant 0 : index
    %4 = vector.load %arg2[%c0_3, %c0_4] : memref<32x16xf32, #tpu.memory_space<vmem>>, vector<32x16xf32>
    %c0_5 = arith.constant 0 : index
    %c0_6 = arith.constant 0 : index
    %5 = vector.load %arg3[%c0_5, %c0_6] : memref<16x64xf32, #tpu.memory_space<vmem>>, vector<16x64xf32>
    %cst_7 = arith.constant dense<0.000000e+00> : vector<32x64xf32>
    %6 = tpu.matmul %4, %5, %cst_7 {dimension_numbers = #tpu.dot_dimension_numbers<[1], [0], [0], [1], [0, 0, 1, 1], [], []>} : vector<32x16xf32>, vector<16x64xf32>, vector<32x64xf32> -> vector<32x64xf32>
    %c0_8 = arith.constant 0 : index
    %c0_9 = arith.constant 0 : index
    %7 = vector.load %arg4[%c0_8, %c0_9] : memref<1x64xf32, #tpu.memory_space<vmem>>, vector<1x64xf32>
    %8 = vector.broadcast %7 : vector<1x64xf32> to vector<32x64xf32>
    %9 = arith.addf %6, %8 : vector<32x64xf32>
    %cst_10 = arith.constant 0.000000e+00 : f32
    %10 = vector.broadcast %cst_10 : f32 to vector<32x64xf32>
    %11 = arith.maximumf %9, %10 : vector<32x64xf32>
    %c0_11 = arith.constant 0 : index
    %c0_12 = arith.constant 0 : index
    %12 = vector.load %arg5[%c0_11, %c0_12] : memref<64x32xf32, #tpu.memory_space<vmem>>, vector<64x32xf32>
    %cst_13 = arith.constant dense<0.000000e+00> : vector<32x32xf32>
    %13 = tpu.matmul %11, %12, %cst_13 {dimension_numbers = #tpu.dot_dimension_numbers<[1], [0], [0], [1], [0, 0, 1, 1], [], []>} : vector<32x64xf32>, vector<64x32xf32>, vector<32x32xf32> -> vector<32x32xf32>
    %c0_14 = arith.constant 0 : index
    %c0_15 = arith.constant 0 : index
    %14 = vector.load %arg6[%c0_14, %c0_15] : memref<1x32xf32, #tpu.memory_space<vmem>>, vector<1x32xf32>
    %15 = vector.broadcast %14 : vector<1x32xf32> to vector<32x32xf32>
    %16 = arith.addf %13, %15 : vector<32x32xf32>
    %cst_16 = arith.constant 0.000000e+00 : f32
    %17 = vector.broadcast %cst_16 : f32 to vector<32x32xf32>
    %18 = arith.maximumf %16, %17 : vector<32x32xf32>
    %c0_17 = arith.constant 0 : index
    %c0_18 = arith.constant 0 : index
    %19 = vector.load %arg7[%c0_17, %c0_18] : memref<128x64xf32, #tpu.memory_space<vmem>>, vector<128x64xf32>
    %cst_19 = arith.constant dense<0.000000e+00> : vector<32x64xf32>
    %20 = tpu.matmul %3, %19, %cst_19 {dimension_numbers = #tpu.dot_dimension_numbers<[1], [0], [0], [1], [0, 0, 1, 1], [], []>} : vector<32x128xf32>, vector<128x64xf32>, vector<32x64xf32> -> vector<32x64xf32>
    %c0_20 = arith.constant 0 : index
    %c0_21 = arith.constant 0 : index
    %21 = vector.load %arg8[%c0_20, %c0_21] : memref<32x64xf32, #tpu.memory_space<vmem>>, vector<32x64xf32>
    %cst_22 = arith.constant dense<0.000000e+00> : vector<32x64xf32>
    %22 = tpu.matmul %18, %21, %cst_22 {dimension_numbers = #tpu.dot_dimension_numbers<[1], [0], [0], [1], [0, 0, 1, 1], [], []>} : vector<32x32xf32>, vector<32x64xf32>, vector<32x64xf32> -> vector<32x64xf32>
    %23 = arith.addf %20, %22 : vector<32x64xf32>
    %c0_23 = arith.constant 0 : index
    %c0_24 = arith.constant 0 : index
    %24 = vector.load %arg9[%c0_23, %c0_24] : memref<1x64xf32, #tpu.memory_space<vmem>>, vector<1x64xf32>
    %25 = vector.broadcast %24 : vector<1x64xf32> to vector<32x64xf32>
    %26 = arith.addf %23, %25 : vector<32x64xf32>
    %cst_25 = arith.constant 0.000000e+00 : f32
    %27 = vector.broadcast %cst_25 : f32 to vector<32x64xf32>
    %28 = arith.maximumf %26, %27 : vector<32x64xf32>
    %c0_26 = arith.constant 0 : index
    %c0_27 = arith.constant 0 : index
    %29 = vector.load %arg10[%c0_26, %c0_27] : memref<64x32xf32, #tpu.memory_space<vmem>>, vector<64x32xf32>
    %cst_28 = arith.constant dense<0.000000e+00> : vector<32x32xf32>
    %30 = tpu.matmul %28, %29, %cst_28 {dimension_numbers = #tpu.dot_dimension_numbers<[1], [0], [0], [1], [0, 0, 1, 1], [], []>} : vector<32x64xf32>, vector<64x32xf32>, vector<32x32xf32> -> vector<32x32xf32>
    %c0_29 = arith.constant 0 : index
    %c0_30 = arith.constant 0 : index
    %31 = vector.load %arg11[%c0_29, %c0_30] : memref<1x32xf32, #tpu.memory_space<vmem>>, vector<1x32xf32>
    %32 = vector.broadcast %31 : vector<1x32xf32> to vector<32x32xf32>
    %33 = arith.addf %30, %32 : vector<32x32xf32>
    %cst_31 = arith.constant 0.000000e+00 : f32
    %34 = vector.broadcast %cst_31 : f32 to vector<32x32xf32>
    %35 = arith.maximumf %33, %34 : vector<32x32xf32>
    %c0_32 = arith.constant 0 : index
    %c0_33 = arith.constant 0 : index
    %36 = vector.load %arg12[%c0_32, %c0_33] : memref<32x128xf32, #tpu.memory_space<vmem>>, vector<32x128xf32>
    %cst_34 = arith.constant dense<0.000000e+00> : vector<32x128xf32>
    %37 = tpu.matmul %35, %36, %cst_34 {dimension_numbers = #tpu.dot_dimension_numbers<[1], [0], [0], [1], [0, 0, 1, 1], [], []>} : vector<32x32xf32>, vector<32x128xf32>, vector<32x128xf32> -> vector<32x128xf32>
    %c0_35 = arith.constant 0 : index
    %c0_36 = arith.constant 0 : index
    %38 = vector.load %arg13[%c0_35, %c0_36] : memref<1x128xf32, #tpu.memory_space<vmem>>, vector<1x128xf32>
    %39 = vector.broadcast %38 : vector<1x128xf32> to vector<32x128xf32>
    %40 = arith.addf %37, %39 : vector<32x128xf32>
    %c0_37 = arith.constant 0 : index
    %c0_38 = arith.constant 0 : index
    %41 = vector.load %arg14[%c0_37, %c0_38] : memref<32x128xf32, #tpu.memory_space<vmem>>, vector<32x128xf32>
    tpu.vector_store %arg14[%c0_37, %c0_38], %40 {strides = array<i32>} : memref<32x128xf32, #tpu.memory_space<vmem>>, vector<32x128xf32>,
    return
  }
  func.func @transform_0(%arg0: i32) -> (i32, i32, i32) {
    %c0_i32 = arith.constant 0 : i32
    %c0_i32_0 = arith.constant 0 : i32
    %c0_i32_1 = arith.constant 0 : i32
    return %arg0, %c0_i32, %c0_i32_0 : i32, i32, i32
  }
  func.func @transform_1(%arg0: i32) -> (i32, i32) {
    %c0_i32 = arith.constant 0 : i32
    %c0_i32_0 = arith.constant 0 : i32
    return %arg0, %c0_i32 : i32, i32
  }
  func.func @transform_2(%arg0: i32) -> (i32, i32) {
    %c0_i32 = arith.constant 0 : i32
    %c0_i32_0 = arith.constant 0 : i32
    %c0_i32_1 = arith.constant 0 : i32
    return %c0_i32, %c0_i32_0 : i32, i32
  }
  func.func @transform_3(%arg0: i32) -> (i32, i32) {
    %c0_i32 = arith.constant 0 : i32
    %c0_i32_0 = arith.constant 0 : i32
    %c0_i32_1 = arith.constant 0 : i32
    return %c0_i32, %c0_i32_0 : i32, i32
  }
  func.func @transform_4(%arg0: i32) -> (i32, i32) {
    %c0_i32 = arith.constant 0 : i32
    %c0_i32_0 = arith.constant 0 : i32
    %c0_i32_1 = arith.constant 0 : i32
    return %c0_i32, %c0_i32_0 : i32, i32
  }
  func.func @transform_5(%arg0: i32) -> (i32, i32) {
    %c0_i32 = arith.constant 0 : i32
    %c0_i32_0 = arith.constant 0 : i32
    %c0_i32_1 = arith.constant 0 : i32
    return %c0_i32, %c0_i32_0 : i32, i32
  }
  func.func @transform_6(%arg0: i32) -> (i32, i32) {
    %c0_i32 = arith.constant 0 : i32
    %c0_i32_0 = arith.constant 0 : i32
    %c0_i32_1 = arith.constant 0 : i32
    return %c0_i32, %c0_i32_0 : i32, i32
  }
  func.func @transform_7(%arg0: i32) -> (i32, i32) {
    %c0_i32 = arith.constant 0 : i32
    %c0_i32_0 = arith.constant 0 : i32
    %c0_i32_1 = arith.constant 0 : i32
    return %c0_i32, %c0_i32_0 : i32, i32
  }
  func.func @transform_8(%arg0: i32) -> (i32, i32) {
    %c0_i32 = arith.constant 0 : i32
    %c0_i32_0 = arith.constant 0 : i32
    %c0_i32_1 = arith.constant 0 : i32
    return %c0_i32, %c0_i32_0 : i32, i32
  }
  func.func @transform_9(%arg0: i32) -> (i32, i32) {
    %c0_i32 = arith.constant 0 : i32
    %c0_i32_0 = arith.constant 0 : i32
    %c0_i32_1 = arith.constant 0 : i32
    return %c0_i32, %c0_i32_0 : i32, i32
  }
  func.func @transform_10(%arg0: i32) -> (i32, i32) {
    %c0_i32 = arith.constant 0 : i32
    %c0_i32_0 = arith.constant 0 : i32
    %c0_i32_1 = arith.constant 0 : i32
    return %c0_i32, %c0_i32_0 : i32, i32
  }
  func.func @transform_11(%arg0: i32) -> (i32, i32) {
    %c0_i32 = arith.constant 0 : i32
    %c0_i32_0 = arith.constant 0 : i32
    %c0_i32_1 = arith.constant 0 : i32
    return %c0_i32, %c0_i32_0 : i32, i32
  }
  func.func @transform_12(%arg0: i32) -> (i32, i32) {
    %c0_i32 = arith.constant 0 : i32
    %c0_i32_0 = arith.constant 0 : i32
    %c0_i32_1 = arith.constant 0 : i32
    return %c0_i32, %c0_i32_0 : i32, i32
  }
  func.func @transform_13(%arg0: i32) -> (i32, i32) {
    %c0_i32 = arith.constant 0 : i32
    %c0_i32_0 = arith.constant 0 : i32
    return %arg0, %c0_i32 : i32, i32
  }
}

module attributes {stable_mosaic.version = 11 : i64} {
  func.func @combined_head_kernel(%arg0: i32, %arg1: memref<32x8x128xf32, #tpu.memory_space<vmem>>, %arg2: memref<32x16xf32, #tpu.memory_space<vmem>>, %arg3: memref<16x64xf32, #tpu.memory_space<vmem>>, %arg4: memref<1x64xf32, #tpu.memory_space<vmem>>, %arg5: memref<64x32xf32, #tpu.memory_space<vmem>>, %arg6: memref<1x32xf32, #tpu.memory_space<vmem>>, %arg7: memref<128x64xf32, #tpu.memory_space<vmem>>, %arg8: memref<32x64xf32, #tpu.memory_space<vmem>>, %arg9: memref<1x64xf32, #tpu.memory_space<vmem>>, %arg10: memref<64x32xf32, #tpu.memory_space<vmem>>, %arg11: memref<1x32xf32, #tpu.memory_space<vmem>>, %arg12: memref<32x128xf32, #tpu.memory_space<vmem>>, %arg13: memref<1x128xf32, #tpu.memory_space<vmem>>, %arg14: memref<32x128xf32, #tpu.memory_space<vmem>>) attributes {dimension_semantics = [#tpu.dimension_semantics<parallel>], iteration_bounds = array<i64: 2>, scalar_prefetch = 0 : i64, scratch_operands = 0 : i64, tpu.core_type = #tpu.core_type<tc>, window_params = [{transform_indices = @transform_0, window_bounds = array<i64: 32, 8, 128>}, {transform_indices = @transform_1, window_bounds = array<i64: 32, 16>}, {pipeline_mode = #tpu.pipeline_mode<synchronous>, transform_indices = @transform_2, window_bounds = array<i64: 16, 64>}, {pipeline_mode = #tpu.pipeline_mode<synchronous>, transform_indices = @transform_3, window_bounds = array<i64: 1, 64>}, {pipeline_mode = #tpu.pipeline_mode<synchronous>, transform_indices = @transform_4, window_bounds = array<i64: 64, 32>}, {pipeline_mode = #tpu.pipeline_mode<synchronous>, transform_indices = @transform_5, window_bounds = array<i64: 1, 32>}, {pipeline_mode = #tpu.pipeline_mode<synchronous>, transform_indices = @transform_6, window_bounds = array<i64: 128, 64>}, {pipeline_mode = #tpu.pipeline_mode<synchronous>, transform_indices = @transform_7, window_bounds = array<i64: 32, 64>}, {pipeline_mode = #tpu.pipeline_mode<synchronous>, transform_indices = @transform_8, window_bounds = array<i64: 1, 64>}, {pipeline_mode = #tpu.pipeline_mode<synchronous>, transform_indices = @transform_9, window_bounds = array<i64: 64, 32>}, {pipeline_mode = #tpu.pipeline_mode<synchronous>, transform_indices = @transform_10, window_bounds = array<i64: 1, 32>}, {pipeline_mode = #tpu.pipeline_mode<synchronous>, transform_indices = @transform_11, window_bounds = array<i64: 32, 128>}, {pipeline_mode = #tpu.pipeline_mode<synchronous>, transform_indices = @transform_12, window_bounds = array<i64: 1, 128>}, {transform_indices = @transform_13, window_bounds = array<i64: 32, 128>}]} {
    %c0 = arith.constant 0 : index
    %c0_0 = arith.constant 0 : index
    %c0_1 = arith.constant 0 : index
    %0 = vector.load %arg1[%c0, %c0_0, %c0_1] : memref<32x8x128xf32, #tpu.memory_space<vmem>>, vector<32x8x128xf32>
    %cst = arith.constant dense<0.000000e+00> : vector<32x128xf32>
    %1 = vector.multi_reduction <add>, %0, %cst [1] : vector<32x8x128xf32> to vector<32x128xf32>
    %cst_2 = arith.constant 8.000000e+00 : f32
    %2 = vector.broadcast %cst_2 : f32 to vector<32x128xf32>
    %3 = arith.divf %1, %2 : vector<32x128xf32>
    %c0_3 = arith.constant 0 : index
    %c0_4 = arith.constant 0 : index
    %4 = vector.load %arg2[%c0_3, %c0_4] : memref<32x16xf32, #tpu.memory_space<vmem>>, vector<32x16xf32>
    %c0_5 = arith.constant 0 : index
    %c0_6 = arith.constant 0 : index
    %5 = vector.load %arg3[%c0_5, %c0_6] : memref<16x64xf32, #tpu.memory_space<vmem>>, vector<16x64xf32>
    %cst_7 = arith.constant dense<0.000000e+00> : vector<32x64xf32>
    %6 = tpu.matmul %4, %5, %cst_7 {dimension_numbers = #tpu.dot_dimension_numbers<[1], [0], [0], [1], [0, 0, 1, 1], [], []>} : vector<32x16xf32>, vector<16x64xf32>, vector<32x64xf32> -> vector<32x64xf32>
    %c0_8 = arith.constant 0 : index
    %c0_9 = arith.constant 0 : index
    %7 = vector.load %arg4[%c0_8, %c0_9] : memref<1x64xf32, #tpu.memory_space<vmem>>, vector<1x64xf32>
    %8 = vector.broadcast %7 : vector<1x64xf32> to vector<32x64xf32>
    %9 = arith.addf %6, %8 : vector<32x64xf32>
    %cst_10 = arith.constant 0.000000e+00 : f32
    %10 = vector.broadcast %cst_10 : f32 to vector<32x64xf32>
    %11 = arith.maximumf %9, %10 : vector<32x64xf32>
    %c0_11 = arith.constant 0 : index
    %c0_12 = arith.constant 0 : index
    %12 = vector.load %arg5[%c0_11, %c0_12] : memref<64x32xf32, #tpu.memory_space<vmem>>, vector<64x32xf32>
    %cst_13 = arith.constant dense<0.000000e+00> : vector<32x32xf32>
    %13 = tpu.matmul %11, %12, %cst_13 {dimension_numbers = #tpu.dot_dimension_numbers<[1], [0], [0], [1], [0, 0, 1, 1], [], []>} : vector<32x64xf32>, vector<64x32xf32>, vector<32x32xf32> -> vector<32x32xf32>
    %c0_14 = arith.constant 0 : index
    %c0_15 = arith.constant 0 : index
    %14 = vector.load %arg6[%c0_14, %c0_15] : memref<1x32xf32, #tpu.memory_space<vmem>>, vector<1x32xf32>
    %15 = vector.broadcast %14 : vector<1x32xf32> to vector<32x32xf32>
    %16 = arith.addf %13, %15 : vector<32x32xf32>
    %cst_16 = arith.constant 0.000000e+00 : f32
    %17 = vector.broadcast %cst_16 : f32 to vector<32x32xf32>
    %18 = arith.maximumf %16, %17 : vector<32x32xf32>
    %c0_17 = arith.constant 0 : index
    %c0_18 = arith.constant 0 : index
    %19 = vector.load %arg7[%c0_17, %c0_18] : memref<128x64xf32, #tpu.memory_space<vmem>>, vector<128x64xf32>
    %cst_19 = arith.constant dense<0.000000e+00> : vector<32x64xf32>
    %20 = tpu.matmul %3, %19, %cst_19 {dimension_numbers = #tpu.dot_dimension_numbers<[1], [0], [0], [1], [0, 0, 1, 1], [], []>} : vector<32x128xf32>, vector<128x64xf32>, vector<32x64xf32> -> vector<32x64xf32>
    %c0_20 = arith.constant 0 : index
    %c0_21 = arith.constant 0 : index
    %21 = vector.load %arg8[%c0_20, %c0_21] : memref<32x64xf32, #tpu.memory_space<vmem>>, vector<32x64xf32>
    %cst_22 = arith.constant dense<0.000000e+00> : vector<32x64xf32>
    %22 = tpu.matmul %18, %21, %cst_22 {dimension_numbers = #tpu.dot_dimension_numbers<[1], [0], [0], [1], [0, 0, 1, 1], [], []>} : vector<32x32xf32>, vector<32x64xf32>, vector<32x64xf32> -> vector<32x64xf32>
    %23 = arith.addf %20, %22 : vector<32x64xf32>
    %c0_23 = arith.constant 0 : index
    %c0_24 = arith.constant 0 : index
    %24 = vector.load %arg9[%c0_23, %c0_24] : memref<1x64xf32, #tpu.memory_space<vmem>>, vector<1x64xf32>
    %25 = vector.broadcast %24 : vector<1x64xf32> to vector<32x64xf32>
    %26 = arith.addf %23, %25 : vector<32x64xf32>
    %cst_25 = arith.constant 0.000000e+00 : f32
    %27 = vector.broadcast %cst_25 : f32 to vector<32x64xf32>
    %28 = arith.maximumf %26, %27 : vector<32x64xf32>
    %c0_26 = arith.constant 0 : index
    %c0_27 = arith.constant 0 : index
    %29 = vector.load %arg10[%c0_26, %c0_27] : memref<64x32xf32, #tpu.memory_space<vmem>>, vector<64x32xf32>
    %cst_28 = arith.constant dense<0.000000e+00> : vector<32x32xf32>
    %30 = tpu.matmul %28, %29, %cst_28 {dimension_numbers = #tpu.dot_dimension_numbers<[1], [0], [0], [1], [0, 0, 1, 1], [], []>} : vector<32x64xf32>, vector<64x32xf32>, vector<32x32xf32> -> vector<32x32xf32>
    %c0_29 = arith.constant 0 : index
    %c0_30 = arith.constant 0 : index
    %31 = vector.load %arg11[%c0_29, %c0_30] : memref<1x32xf32, #tpu.memory_space<vmem>>, vector<1x32xf32>
    %32 = vector.broadcast %31 : vector<1x32xf32> to vector<32x32xf32>
    %33 = arith.addf %30, %32 : vector<32x32xf32>
    %cst_31 = arith.constant 0.000000e+00 : f32
    %34 = vector.broadcast %cst_31 : f32 to vector<32x32xf32>
    %35 = arith.maximumf %33, %34 : vector<32x32xf32>
    %c0_32 = arith.constant 0 : index
    %c0_33 = arith.constant 0 : index
    %36 = vector.load %arg12[%c0_32, %c0_33] : memref<32x128xf32, #tpu.memory_space<vmem>>, vector<32x128xf32>
    %cst_34 = arith.constant dense<0.000000e+00> : vector<32x128xf32>
    %37 = tpu.matmul %35, %36, %cst_34 {dimension_numbers = #tpu.dot_dimension_numbers<[1], [0], [0], [1], [0, 0, 1, 1], [], []>} : vector<32x32xf32>, vector<32x128xf32>, vector<32x128xf32> -> vector<32x128xf32>
    %c0_35 = arith.constant 0 : index
    %c0_36 = arith.constant 0 : index
    %38 = vector.load %arg13[%c0_35, %c0_36] : memref<1x128xf32, #tpu.memory_space<vmem>>, vector<1x128xf32>
    %39 = vector.broadcast %38 : vector<1x128xf32> to vector<32x128xf32>
    %40 = arith.addf %37, %39 : vector<32x128xf32>
    %c0_37 = arith.constant 0 : index
    %c0_38 = arith.constant 0 : index
    %41 = vector.load %arg14[%c0_37, %c0_38] : memref<32x128xf32, #tpu.memory_space<vmem>>, vector<32x128xf32>
    tpu.vector_store %arg14[%c0_37, %c0_38], %40 {strides = array<i32>} : memref<32x128xf32, #tpu.memory_space<vmem>>, vector<32x128xf32>,
    return
  }
  func.func @transform_0(%arg0: i32) -> (i32, i32, i32) {
    %c0_i32 = arith.constant 0 : i32
    %c0_i32_0 = arith.constant 0 : i32
    %c0_i32_1 = arith.constant 0 : i32
    return %arg0, %c0_i32, %c0_i32_0 : i32, i32, i32
  }
  func.func @transform_1(%arg0: i32) -> (i32, i32) {
    %c0_i32 = arith.constant 0 : i32
    %c0_i32_0 = arith.constant 0 : i32
    return %arg0, %c0_i32 : i32, i32
  }
  func.func @transform_2(%arg0: i32) -> (i32, i32) {
    %c0_i32 = arith.constant 0 : i32
    %c0_i32_0 = arith.constant 0 : i32
    %c0_i32_1 = arith.constant 0 : i32
    return %c0_i32, %c0_i32_0 : i32, i32
  }
  func.func @transform_3(%arg0: i32) -> (i32, i32) {
    %c0_i32 = arith.constant 0 : i32
    %c0_i32_0 = arith.constant 0 : i32
    %c0_i32_1 = arith.constant 0 : i32
    return %c0_i32, %c0_i32_0 : i32, i32
  }
  func.func @transform_4(%arg0: i32) -> (i32, i32) {
    %c0_i32 = arith.constant 0 : i32
    %c0_i32_0 = arith.constant 0 : i32
    %c0_i32_1 = arith.constant 0 : i32
    return %c0_i32, %c0_i32_0 : i32, i32
  }
  func.func @transform_5(%arg0: i32) -> (i32, i32) {
    %c0_i32 = arith.constant 0 : i32
    %c0_i32_0 = arith.constant 0 : i32
    %c0_i32_1 = arith.constant 0 : i32
    return %c0_i32, %c0_i32_0 : i32, i32
  }
  func.func @transform_6(%arg0: i32) -> (i32, i32) {
    %c0_i32 = arith.constant 0 : i32
    %c0_i32_0 = arith.constant 0 : i32
    %c0_i32_1 = arith.constant 0 : i32
    return %c0_i32, %c0_i32_0 : i32, i32
  }
  func.func @transform_7(%arg0: i32) -> (i32, i32) {
    %c0_i32 = arith.constant 0 : i32
    %c0_i32_0 = arith.constant 0 : i32
    %c0_i32_1 = arith.constant 0 : i32
    return %c0_i32, %c0_i32_0 : i32, i32
  }
  func.func @transform_8(%arg0: i32) -> (i32, i32) {
    %c0_i32 = arith.constant 0 : i32
    %c0_i32_0 = arith.constant 0 : i32
    %c0_i32_1 = arith.constant 0 : i32
    return %c0_i32, %c0_i32_0 : i32, i32
  }
  func.func @transform_9(%arg0: i32) -> (i32, i32) {
    %c0_i32 = arith.constant 0 : i32
    %c0_i32_0 = arith.constant 0 : i32
    %c0_i32_1 = arith.constant 0 : i32
    return %c0_i32, %c0_i32_0 : i32, i32
  }
  func.func @transform_10(%arg0: i32) -> (i32, i32) {
    %c0_i32 = arith.constant 0 : i32
    %c0_i32_0 = arith.constant 0 : i32
    %c0_i32_1 = arith.constant 0 : i32
    return %c0_i32, %c0_i32_0 : i32, i32
  }
  func.func @transform_11(%arg0: i32) -> (i32, i32) {
    %c0_i32 = arith.constant 0 : i32
    %c0_i32_0 = arith.constant 0 : i32
    %c0_i32_1 = arith.constant 0 : i32
    return %c0_i32, %c0_i32_0 : i32, i32
  }
  func.func @transform_12(%arg0: i32) -> (i32, i32) {
    %c0_i32 = arith.constant 0 : i32
    %c0_i32_0 = arith.constant 0 : i32
    %c0_i32_1 = arith.constant 0 : i32
    return %c0_i32, %c0_i32_0 : i32, i32
  }
  func.func @transform_13(%arg0: i32) -> (i32, i32) {
    %c0_i32 = arith.constant 0 : i32
    %c0_i32_0 = arith.constant 0 : i32
    return %arg0, %c0_i32 : i32, i32
  }
}

</mosaic_0001>

<bundles_post_ra>
// kernel: tpu_custom_call.1
= control target key start
LH: loop header
LB: loop body
LE: loop exit
PB: predicated region body
PF: predicated region fallthrough
CT: control target
= control target key end

     0   :  { %s1924_s0 = inlined_call_operand.hbm [shape: f32[64,8,128], index: 0, kind: input, shape index: {}]   ;;  %s1925_s1 = inlined_call_operand.vmem [shape: f32[64,16], index: 1, kind: input, shape index: {}]   ;;  %s1926_s2 = inlined_call_operand.vmem [shape: f32[16,64], index: 2, kind: input, shape index: {}]   ;;  %s1927_s3 = inlined_call_operand.vmem [shape: f32[1,64], index: 3, kind: input, shape index: {}]   ;;  %s1928_s4 = inlined_call_operand.vmem [shape: f32[64,32], index: 4, kind: input, shape index: {}]   ;;  %s1929_s5 = inlined_call_operand.vmem [shape: f32[1,32], index: 5, kind: input, shape index: {}]   ;;  %s1930_s6 = inlined_call_operand.vmem [shape: f32[128,64], index: 6, kind: input, shape index: {}]   ;;  %s1931_s7 = inlined_call_operand.vmem [shape: f32[32,64], index: 7, kind: input, shape index: {}]   ;;  %s1932_s8 = inlined_call_operand.vmem [shape: f32[1,64], index: 8, kind: input, shape index: {}]   ;;  %s1933_s9 = inlined_call_operand.vmem [shape: f32[64,32], index: 9, kind: input, shape index: {}]   ;;  %s1934_s10 = inlined_call_operand.vmem [shape: f32[1,32], index: 10, kind: input, shape index: {}]   ;;  %s1935_s11 = inlined_call_operand.vmem [shape: f32[32,128], index: 11, kind: input, shape index: {}]   ;;  %s1936_s12 = inlined_call_operand.vmem [shape: f32[1,128], index: 12, kind: input, shape index: {}]   ;;  %s1937_s13 = inlined_call_operand.hbm [shape: f32[64,128], index: 13, kind: output, shape index: {}]  }
   0x1   :  { %1946 = sst [smem:[#allocation14_spill]] %s1924_s0 }
   0x2   :  { %1947 = sst [smem:[#allocation15_spill]] %s1937_s13 }
   0x3   :  { %18 = vsyncpa [#allocation3], 0 }
   0x4   :  { %20 = vsyncpa [#allocation3 + $0x1], 0 }
   0x5   :  { %21 = vsyncpa [#allocation4], 0 }
   0x6   :  { %23 = vsyncpa [#allocation4 + $0x1], 0  ;;  %s1522_s25 = smov 0   ;;  %s1524_s26 = smov 0  }
   0x7   :  { %s1526_s27 = smov 0   ;;  %s1528_s28 = smov 0  }
   0x8 LB: > { %1948 = sst [smem:[#allocation8_spill]] %s1433_s25  ;;  %s1543_s29 = sadd.s32 4294967295, %s1445_s28   ;;  %s1445_s28 = sphi %s1528_s28, %s1965_s28   ;;  %s1441_s27 = sphi %s1526_s27, %s1967_s27   ;;  %s1437_s26 = sphi %s1524_s26, %s1969_s26   ;;  %s1433_s25 = sphi %s1522_s25, %s1968_s25  }
   0x9   : > { %1949 = sst [smem:[#allocation9_spill]] %s1441_s27  ;;  %s1247_s30 = sadd.s32 4294967294, %s1445_s28  }
   0xa   : > { %s1547_s14 = sadd.s32 1, %s1445_s28   ;;  %s36_s15 = sadd.s32 1, %s1441_s27 }
   0xb   : > { %1950 = sst [smem:[#allocation10_spill]] %s1547_s14  ;;  %s33_s16 = ssub.s32 %s1445_s28, %s1547_s14 }
   0xc   : > { %p43_p0 = scmp.ne.s32.totalorder %s1441_s27, %s1437_s26  ;;  %p34_p1 = scmp.eq.s32.totalorder %s33_s16, 0 }
   0xd   : > { %p44_p2 = scmp.eq.s32.totalorder %s1445_s28, 0  ;;  %p49_p3 = scmp.ne.s32.totalorder %s1437_s26, %s1433_s25 }
   0xe   : > { %p50_p4 = scmp.eq.s32.totalorder %s1543_s29, 0  ;;  %p330_p7 = scmp.eq.s32.totalorder %s1543_s29, 1 }
   0xf   : > { %s1559_s17 = scalar_select %p34_p1, %s1441_s27, %s36_s15  }
  0x10   : > { %p1561_p5 = por %p44_p2, %p43_p0  ;;  %p1565_p6 = por %p50_p4, %p49_p3 }
  0x11   : > { %1951 = sst [smem:[#allocation11_spill]] %s1559_s17  ;;  %p336_p8 = scmp.eq.s32.totalorder %s1247_s30, 1 }
  0x12   : > { %p1303_p10 = scmp.lt.s32.totalorder %s1445_s28, 2  ;;  %p1572_p11 = por %p330_p7, %p43_p0 }
  0x13   : > { %p1576_p12 = por %p336_p8, %p49_p3  ;;  %s389_s22 = sand.u32 1, %s1441_s27  }
  0x14   : > { %s1954_s20 = scalar_select %p1572_p11, 1, 0 }
  0x15   : > { %s1956_s21 = scalar_select %p1576_p12, 1, 0 }
  0x16   : > { %1955 = sst [smem:[#allocation12_spill]] %s1954_s20  ;;  %s1283_s23 = sshll.u32 %s1445_s28, 8 }
  0x17   : > { %1957 = sst [smem:[#allocation13_spill]] %s1956_s21  ;;  %s1250_s24 = sshll.u32 %s389_s22, 8 }
  0x18   : > { %s1958_s0 = sld [smem:[#allocation14_spill]]  ;;  %s393_s30 = scalar_lea.vmem [#allocation2], %s1250_s24 }
  0x19   : > { %s401_s25 = sshll.u32 %s393_s30, 4  ;;  %p1587_p13 = pnand %p1303_p10, %p1561_p5  ;;  %s402_s25 = int_to_ptr.vmem [resolvable:$true] %s401_s25 }
  0x1a   : > { %p1253_p0 = scmp.ge.s32.totalorder %s1445_s28, 1  ;;  %p418_p1 = scmp.lt.s32.totalorder %s1445_s28, 3 }
  0x1b   : > { %s390_s27 = scalar_lea.sflag [#allocation3], %s389_s22  ;;  %p1353_p3 = pneg %p1587_p13 }
  0x1e   : > { %s398_s17 = scalar_lea.hbm %s1958_s0, %s1283_s23  ;;  %s1356_s18 = scalar_lea.hbm %s1958_s0, 512 }
  0x1f   : > { %s399_s14 = sshll.u32 %s398_s17, 4  ;;  %s400_s14 = int_to_ptr.hbm [resolvable:$true] %s399_s14 }
  0x20   : > { %s1349_s21 = sshra.s32 %s400_s14, 4  ;;  %s1350_s21 = int_to_ptr.hbm [resolvable:$true] %s1349_s21 }
  0x21   : > { %s1351_s20 = scalar_lea.hbm %s1350_s21, 256  ;;  %p1357_p5 = scmp.lt.s32.totalorder %s1350_s21, %s1958_s0 }
  0x22   : > { %p1352_p2 = scmp.ne.s32.totalorder %s1350_s21, %s1351_s20  ;;  %p1358_p8 = scmp.lt.s32.totalorder %s1356_s18, %s1351_s20 }
  0x24   : > { %p1354_p4 = pnand %p1353_p3, %p1352_p2  ;;  %p1359_p10 = por %p1358_p8, %p1357_p5 }
  0x26   : > { %p1355_p7 = pneg %p1354_p4 }
  0x28   : > { %p1360_p9 = pnand %p1359_p10, %p1355_p7 }
  0x2a   : > { %1363 = shalt.err (!%p1360_p9)
}
  0x2b   : > { %s1447_s22 = smov 128   ;;  %s1448_s16 = smov 8  }
  0x2c   : > { %1298 = dma.hbm_to_vmem [thread:$0]  (!%p1587_p13), %s400_s14, 4096, %s402_s25, %s390_s27, %s1447_s22, %s1447_s22, %s1448_s16  }
  0x2d   : > { %p419_p2 = pnand %p1253_p0, %p418_p1 }
  0x2e   : > { %s1608_s30 = sand.u32 (!%p419_p2), 1, %s1437_s26  }
  0x2f   : > { %422 = sbr.rel (%p419_p2) target bundleno = 750 (0x2ee), region = 72  ;;  %s1254_s20 = sshll.u32 (!%p419_p2), %s1608_s30, 8 }
  0x30   : > { %s425_s21 = scalar_lea.sflag (!%p419_p2), [#allocation3], %s1608_s30  ;;  %s1612_s17 = scalar_lea.vmem (!%p419_p2), [#allocation2], %s1254_s20 }
  0x34   : > { %1424 = dma.done.wait (%p1565_p6), %s425_s21, 4096  }
  0x35   : > { %1426 = vsyncadd (%p1565_p6), %s425_s21, 4294963200  ;;  %s1256_s13 = sshll.u32 %s1543_s29, 2  ;;  %v753_v0 = vld [vmem:[%s1926_s2 + $0x8] sm:$0xff]  ;;  %v752_v1 = vld [vmem:[%s1926_s2] sm:$0xff]  ;;  %vm758_vm0 = vcmask 130048   ;;  %vm816_vm1 = vcmask 523264  }
  0x36   : > { %p479_p9 = scmp.lt.s32.totalorder %s1256_s13, 7  ;;  %785 = vmatpush.msra.mxu0 %v753_v0  ;;  %1285 = vmatpush.msra.mxu1 %v753_v0  ;;  %v811_v4 = vld [vmem:[%s1928_s4 + $0x38] sm:$0xff]  ;;  %v810_v5 = vld [vmem:[%s1928_s4 + $0x30] sm:$0xff]  ;;  %v809_v6 = vld [vmem:[%s1928_s4 + $0x28] sm:$0xff]  ;;  %v1449_v49 = vmov 8.0   ;;  %vm956_vm3 = vcmask 1041409  }
  0x37   : > { %v808_v7 = vld [vmem:[%s1928_s4 + $0x20] sm:$0xff]  ;;  %v807_v10 = vld [vmem:[%s1928_s4 + $0x18] sm:$0xff]  ;;  %v806_v11 = vld [vmem:[%s1928_s4 + $0x10] sm:$0xff]  ;;  %1347 = vrcp.f32 %v1449_v49  ;;  %vm958_vm4 = vcmask 1042434   ;;  %vm960_vm5 = vcmask 1043459   ;;  %vm962_vm6 = vcmask 1044484  }
  0x38   : > { %s1971_s13 = smov (!%p479_p9, %s1256_s13), 7  ;;  %786 = vmatpush.msra.mxu0 %v752_v1  ;;  %1286 = vmatpush.msra.mxu1 %v752_v1  ;;  %v805_v12 = vld [vmem:[%s1928_s4 + $0x8] sm:$0xff]  ;;  %v804_v13 = vld [vmem:[%s1928_s4] sm:$0xff]  ;;  %v877_v15 = vld [vmem:[%s1930_s6 + $0x78] sm:$0xff]  ;;  %vm964_vm7 = vcmask 1045509   ;;  %vm966_vm8 = vcmask 1046534  }
  0x39   : > { %s1257_s25 = sshll.u32 %s1971_s13, 3  ;;  %v1659_v14 = vld [vmem:[%s1927_s3] ss:$0 sm:$0xff]  ;;  %v876_v16 = vld [vmem:[%s1930_s6 + $0x70] sm:$0xff]  ;;  %995 = vmatpush.msra.mxu3 %v877_v15  ;;  %v875_v17 = vld [vmem:[%s1930_s6 + $0x68] sm:$0xff]  ;;  %vm968_vm9 = vcmask 1047559  }
  0x3a   : > { %s482_s23 = scalar_lea.vmem %s1925_s1, %s1257_s25  ;;  %837 = vmatpush.msrb.mxu1 %v811_v4  ;;  %v881_v18 = vld [vmem:[%s1931_s7 + $0x18] sm:$0xff]  ;;  %v880_v20 = vld [vmem:[%s1931_s7 + $0x10] sm:$0xff]  ;;  %v874_v22 = vld [vmem:[%s1930_s6 + $0x60] sm:$0xff]  ;;  %vm882_vm10 = vcmask 261120   ;;  %s1255_s18 = sshll.u32 %s1608_s30, 5 }
  0x3b   : > { %v748_v2 = vld [vmem:[%s482_s23] sm:$0xff]  ;;  %v750_v3 = vld [vmem:[%s482_s23 + $0x10] sm:$0xff]  ;;  %v749_v8 = vld [vmem:[%s482_s23 + $0x8] sm:$0xff]  ;;  %996 = vmatpush.msra.mxu3 %v876_v16  ;;  %1287 = vmatpush.msra.mxu2 %v881_v18  ;;  %s476_s22 = scalar_lea.vmem [#allocation5], %s1255_s18  ;;  %s1961_s20 = sld [smem:[#allocation15_spill]] }
  0x3c   : > { %1258 = vmatmul.msk.f32.vlgmr.msra.gmra.mxu0 %vm758_vm0, %v748_v2  ;;  %1260 = vmatmul.msk.f32.vlgmr.msra.gmra.mxu1 %vm758_vm0, %v750_v3  ;;  %v751_v9 = vld [vmem:[%s482_s23 + $0x18] sm:$0xff]  ;;  %v879_v24 = vld [vmem:[%s1931_s7 + $0x8] sm:$0xff]  ;;  %v872_v26 = vld [vmem:[%s1930_s6 + $0x50] sm:$0xff]  ;;  %s1159_s13 = sshll.u32 %s476_s22, 4  ;;  %s1147_s27 = scalar_lea.sflag [#allocation4], %s1608_s30  ;;  %s1160_s13 = int_to_ptr.vmem [resolvable:$true] %s1159_s13 }
  0x3d   : > { %838 = vmatpush.msrb.mxu1 %v810_v5  ;;  %997 = vmatpush.msra.mxu3 %v875_v17  ;;  %v873_v23 = vld [vmem:[%s1930_s6 + $0x58] sm:$0xff]  ;;  %v485_v27 = vld [vmem:[%s1612_s17] sm:$0xff]  ;;  %v486_v28 = vld [vmem:[%s1612_s17 + $0x8] sm:$0xff]  ;;  %v1348_v3 = vpop.eup %1347 }
  0x3e   : > { %1288 = vmatpush.msra.mxu2 %v880_v20  ;;  %v487_v29 = vld [vmem:[%s1612_s17 + $0x10] sm:$0xff]  ;;  %v488_v30 = vld [vmem:[%s1612_s17 + $0x18] sm:$0xff]  ;;  %v489_v31 = vld [vmem:[%s1612_s17 + $0x20] sm:$0xff]  ;;  %v517_v32 = vrot.slane %v485_v27, 4  ;;  %v523_v33 = vrot.slane %v486_v28, 4  ;;  %v710_v17 = vmul.f32 8.0, %v1348_v3  ;;  %vm714_vm2 = vweird.f32 %v1348_v3 }
  0x3f   : > { %839 = vmatpush.msrb.mxu1 %v809_v6  ;;  %998 = vmatpush.msra.mxu3 %v874_v22  ;;  %v490_v34 = vld [vmem:[%s1612_s17 + $0x28] sm:$0xff]  ;;  %v491_v35 = vld [vmem:[%s1612_s17 + $0x30] sm:$0xff]  ;;  %v492_v36 = vld [vmem:[%s1612_s17 + $0x38] sm:$0xff]  ;;  %v529_v37 = vrot.slane %v487_v29, 4  ;;  %v535_v38 = vrot.slane %v488_v30, 4  ;;  %v541_v39 = vrot.slane %v489_v31, 4 }
  0x40   : > { %1289 = vmatpush.msra.mxu2 %v879_v24  ;;  %v518_v40 = vadd.f32 %v517_v32, %v485_v27  ;;  %v524_v41 = vadd.f32 %v523_v33, %v486_v28  ;;  %v547_v42 = vrot.slane %v490_v34, 4  ;;  %v553_v43 = vrot.slane %v491_v35, 4  ;;  %v871_v45 = vld [vmem:[%s1930_s6 + $0x48] sm:$0xff]  ;;  %v870_v56 = vld [vmem:[%s1930_s6 + $0x40] sm:$0xff]  ;;  %v869_v62 = vld [vmem:[%s1930_s6 + $0x38] sm:$0xff] }
  0x41   : > { %840 = vmatpush.msrb.mxu1 %v808_v7  ;;  %999 = vmatpush.msra.mxu3 %v873_v23  ;;  %v530_v46 = vadd.f32 %v529_v37, %v487_v29  ;;  %v536_v47 = vadd.f32 %v535_v38, %v488_v30  ;;  %v542_v48 = vadd.f32 %v541_v39, %v489_v31  ;;  %v559_v54 = vrot.slane %v492_v36, 4  ;;  %v868_v4 = vld [vmem:[%s1930_s6 + $0x30] sm:$0xff]  ;;  %s1399_s15 = scalar_lea.hbm %s1961_s20, 64 }
  0x42   : > { %v519_v51 = vrot.slane %v518_v40, 2  ;;  %v525_v52 = vrot.slane %v524_v41, 2  ;;  %v548_v53 = vadd.f32 %v547_v42, %v490_v34  ;;  %v554_v59 = vadd.f32 %v553_v43, %v491_v35  ;;  %v864_v32 = vld [vmem:[%s1930_s6 + $0x10] sm:$0xff] }
  0x43   : > { %841 = vmatpush.msrb.mxu1 %v807_v10  ;;  %1000 = vmatpush.msra.mxu3 %v872_v26  ;;  %v531_v57 = vrot.slane %v530_v46, 2  ;;  %v537_v58 = vrot.slane %v536_v47, 2  ;;  %v543_v60 = vrot.slane %v542_v48, 2  ;;  %v867_v10 = vld [vmem:[%s1930_s6 + $0x28] sm:$0xff]  ;;  %v865_v26 = vld [vmem:[%s1930_s6 + $0x18] sm:$0xff] }
  0x44   : > { %1259 = vmatmul.msk.f32.gmra.mxu0 %vm758_vm0, %v749_v8  ;;  %1261 = vmatmul.msk.f32.gmra.mxu1 %vm758_vm0, %v751_v9  ;;  %v549_v63 = vrot.slane %v548_v53, 2  ;;  %v520_v1 = vadd.f32 %v519_v51, %v518_v40  ;;  %v526_v2 = vadd.f32 %v525_v52, %v524_v41  ;;  %v555_v7 = vrot.slane %v554_v59, 2 }
  0x45   : > { %842 = vmatpush.msrb.mxu1 %v806_v11  ;;  %1001 = vmatpush.msra.mxu3 %v871_v45  ;;  %v532_v5 = vadd.f32 %v531_v57, %v530_v46  ;;  %v538_v6 = vadd.f32 %v537_v58, %v536_v47  ;;  %v560_v8 = vadd.f32 %v559_v54, %v492_v36 }
  0x46   : > { %v544_v9 = vadd.f32 %v543_v60, %v542_v48  ;;  %v550_v11 = vadd.f32 %v549_v63, %v548_v53  ;;  %v521_v15 = vrot.slane %v520_v1, 1  ;;  %v556_v16 = vadd.f32 %v555_v7, %v554_v59  ;;  %v493_v60 = vld [vmem:[%s1612_s17 + $0x40] sm:$0xff]  ;;  %v498_v7 = vld [vmem:[%s1612_s17 + $0x68] sm:$0xff] }
  0x47   : > { %843 = vmatpush.msrb.mxu1 %v805_v12  ;;  %1002 = vmatpush.msra.mxu3 %v870_v56  ;;  %v561_v12 = vrot.slane %v560_v8, 2  ;;  %v539_v22 = vrot.slane %v538_v6, 1  ;;  %v565_v63 = vrot.slane %v493_v60, 4 }
  0x48   : > { %v551_v27 = vrot.slane %v550_v11, 1  ;;  %v557_v29 = vrot.slane %v556_v16, 1  ;;  %v522_v33 = vadd.f32 %v521_v15, %v520_v1  ;;  %v496_v1 = vld [vmem:[%s1612_s17 + $0x58] sm:$0xff]  ;;  %v595_v15 = vrot.slane %v498_v7, 4 }
  0x49   : > { %844 = vmatpush.msrb.mxu1 %v804_v13  ;;  %1003 = vmatpush.msra.mxu3 %v869_v62  ;;  %v562_v23 = vadd.f32 %v561_v12, %v560_v8  ;;  %v540_v36 = vadd.f32 %v539_v22, %v538_v6  ;;  %v495_v62 = vld [vmem:[%s1612_s17 + $0x50] sm:$0xff]  ;;  %v583_v6 = vrot.slane %v496_v1, 4 }
  0x4a   : > { %v552_v39 = vadd.f32 %v551_v27, %v550_v11  ;;  %v558_v41 = vadd.f32 %v557_v29, %v556_v16  ;;  %v500_v16 = vld [vmem:[%s1612_s17 + $0x78] sm:$0xff] }
  0x4b   : > { %907 = vmatpush.msra.mxu1 %v881_v18  ;;  %1004 = vmatpush.msra.mxu3 %v868_v4  ;;  %v563_v30 = vrot.slane %v562_v23, 1  ;;  %v566_v4 = vadd.f32 %v565_v63, %v493_v60  ;;  %v607_v27 = vrot.slane %v500_v16, 4 }
  0x4d   : > { %908 = vmatpush.msra.mxu1 %v880_v20  ;;  %v527_v20 = vrot.slane %v526_v2, 1  ;;  %1005 = vmatpush.msra.mxu3 %v867_v10  ;;  %v564_v42 = vadd.f32 %v563_v30, %v562_v23  ;;  %v499_v10 = vld [vmem:[%s1612_s17 + $0x70] sm:$0xff]  ;;  %v567_v11 = vrot.slane %v566_v4, 2  ;;  %v596_v23 = vadd.f32 %v595_v15, %v498_v7 }
  0x4f   : > { %909 = vmatpush.msra.mxu1 %v879_v24  ;;  %v545_v24 = vrot.slane %v544_v9, 1  ;;  %v528_v34 = vadd.f32 %v527_v20, %v526_v2  ;;  %v577_v2 = vrot.slane %v495_v62, 4  ;;  %v568_v20 = vadd.f32 %v567_v11, %v566_v4  ;;  %v506_v11 = vld [vmem:[%s1612_s17 + $0xa8] sm:$0xff] }
  0x51   : > { %v546_v37 = vadd.f32 %v545_v24, %v544_v9  ;;  %v578_v8 = vadd.f32 %v577_v2, %v495_v62  ;;  %v504_v62 = vld [vmem:[%s1612_s17 + $0x98] sm:$0xff] }
  0xb9   : > { %v788_v19 = vpop.f32.mrf.mxu0  ;;  %v794_v44 = vpop.f32.mrf.mxu1 }
  0xba   : > { %v789_v21 = vadd.f32 %v1659_v14, %v788_v19  ;;  %v795_v0 = vadd.f32 %v1659_v14, %v794_v44  ;;  %v866_v19 = vld [vmem:[%s1930_s6 + $0x20] sm:$0xff] }
  0xbb   : > { %1006 = vmatpush.msra.mxu3 %v866_v19  ;;  %v862_v44 = vld [vmem:[%s1930_s6] sm:$0xff]  ;;  %v601_v19 = vrot.slane %v499_v10, 4 }
  0xbc   : > { %v800_v25 = vmax.f32 %v789_v21, 0.0  ;;  %v802_v13 = vmax.f32 %v795_v0, 0.0  ;;  %v533_v21 = vrot.slane %v532_v5, 1 }
  0xbd   : > { %1007 = vmatpush.msra.mxu3 %v865_v26  ;;  %v602_v26 = vadd.f32 %v601_v19, %v499_v10 }
  0xbe   : > { %1262 = vmatmul.msk.f32.vlgmr.msrb.gmra.mxu1 %vm816_vm1, %v800_v25  ;;  %v711_v25 = vsub.f32 1.0, %v710_v17  ;;  %v534_v35 = vadd.f32 %v533_v21, %v532_v5  ;;  %v579_v17 = vrot.slane %v578_v8, 2 }
  0xbf   : > { %1008 = vmatpush.msra.mxu3 %v864_v32 }
  0xc0   : > { %v712_v31 = vmul.f32 %v1348_v3, %v711_v25  ;;  %v580_v24 = vadd.f32 %v579_v17, %v578_v8 }
  0xc1   : > { %v791_v50 = vpop.f32.mrf.mxu0  ;;  %v797_v18 = vpop.f32.mrf.mxu1 }
  0xc2   : > { %v792_v55 = vadd.f32 %v1659_v14, %v791_v50  ;;  %v798_v28 = vadd.f32 %v1659_v14, %v797_v18  ;;  %v713_v38 = vadd.f32 %v1348_v3, %v712_v31  ;;  %v863_v14 = vld [vmem:[%s1930_s6 + $0x8] sm:$0xff]  ;;  %v597_v31 = vrot.slane %v596_v23, 2 }
  0xc3   : > { %1009 = vmatpush.msra.mxu3 %v863_v14  ;;  %v581_v32 = vrot.slane %v580_v24, 1 }
  0xc4   : > { %v801_v61 = vmax.f32 %v792_v55, 0.0  ;;  %v803_v40 = vmax.f32 %v798_v28, 0.0  ;;  %v1731_v43 = vsel %vm714_vm2, %v1348_v3, %v713_v38  ;;  %v497_v3 = vld [vmem:[%s1612_s17 + $0x60] sm:$0xff]  ;;  %v569_v28 = vrot.slane %v568_v20, 1 }
  0xc5   : > { %v716_v45 = vmul.f32 %v1731_v43, %v522_v33  ;;  %v717_v46 = vmul.f32 %v1731_v43, %v528_v34  ;;  %v718_v47 = vmul.f32 %v1731_v43, %v534_v35  ;;  %v719_v48 = vmul.f32 %v1731_v43, %v540_v36  ;;  %1010 = vmatpush.msra.mxu3 %v862_v44  ;;  %v501_v44 = vld [vmem:[%s1612_s17 + $0x80] sm:$0xff] }
  0xc6   : > { %1263 = vmatmul.msk.f32.gmra.mxu1 %vm816_vm1, %v801_v61  ;;  %v720_v49 = vmul.f32 %v1731_v43, %v546_v37  ;;  %v721_v50 = vmul.f32 %v1731_v43, %v552_v39  ;;  %v722_v52 = vmul.f32 %v1731_v43, %v558_v41  ;;  %v723_v54 = vmul.f32 %v1731_v43, %v564_v42  ;;  %v494_v61 = vld [vmem:[%s1612_s17 + $0x48] sm:$0xff]  ;;  %v878_v39 = vld [vmem:[%s1931_s7] sm:$0xff] }
  0xc7   : > { %v957_v51 = vsel %vm956_vm3, %v717_v46, %v716_v45  ;;  %v571_v0 = vrot.slane %v494_v61, 4  ;;  %v589_v9 = vrot.slane %v497_v3, 4  ;;  %v603_v34 = vrot.slane %v602_v26, 2  ;;  %910 = vmatpush.msra.mxu1 %v878_v39  ;;  %1290 = vmatpush.msra.mxu2 %v878_v39 }
  0xc8   : > { %v959_v53 = vsel %vm958_vm4, %v718_v47, %v957_v51  ;;  %v608_v35 = vadd.f32 %v607_v27, %v500_v16  ;;  %v570_v36 = vadd.f32 %v569_v28, %v568_v20  ;;  %v598_v14 = vadd.f32 %v597_v31, %v596_v23  ;;  %v507_v16 = vld [vmem:[%s1612_s17 + $0xb0] sm:$0xff] }
  0xc9   : > { %v961_v55 = vsel %vm960_vm5, %v719_v48, %v959_v53  ;;  %v572_v5 = vadd.f32 %v571_v0, %v494_v61  ;;  %v590_v18 = vadd.f32 %v589_v9, %v497_v3  ;;  %v604_v42 = vadd.f32 %v603_v34, %v602_v26  ;;  %v505_v3 = vld [vmem:[%s1612_s17 + $0xa0] sm:$0xff] }
  0xca   : > { %v963_v56 = vsel %vm962_vm6, %v720_v49, %v961_v55  ;;  %v599_v46 = vrot.slane %v598_v14, 1  ;;  %v609_v47 = vrot.slane %v608_v35, 2  ;;  %v724_v48 = vmul.f32 %v1731_v43, %v570_v36  ;;  %v502_v49 = vld [vmem:[%s1612_s17 + $0x88] sm:$0xff] }
  0xcb   : > { %v965_v57 = vsel %vm964_vm7, %v721_v50, %v963_v56  ;;  %v573_v12 = vrot.slane %v572_v5, 2  ;;  %v591_v25 = vrot.slane %v590_v18, 2  ;;  %v605_v51 = vrot.slane %v604_v42, 1 }
  0xcc   : > { %v967_v58 = vsel %vm966_vm8, %v722_v52, %v965_v57  ;;  %v610_v55 = vadd.f32 %v609_v47, %v608_v35  ;;  %v503_v57 = vld [vmem:[%s1612_s17 + $0x90] sm:$0xff]  ;;  %v619_v63 = vrot.slane %v502_v49, 4  ;;  %v637_v19 = vrot.slane %v505_v3, 4 }
  0xcd   : > { %v969_v59 = vsel %vm968_vm9, %v723_v54, %v967_v58  ;;  %v574_v21 = vadd.f32 %v573_v12, %v572_v5  ;;  %v592_v33 = vadd.f32 %v591_v25, %v590_v18  ;;  %v600_v54 = vadd.f32 %v599_v46, %v598_v14 }
  0xce   : > { %1264 = vmatmul.msk.f32.gmra.mxu1 %vm816_vm1, %v802_v13  ;;  %1011 = vmatmul.f32.vlgmr.msra.gmra.mxu3 %v969_v59  ;;  %v584_v13 = vadd.f32 %v583_v6, %v496_v1  ;;  %v613_v58 = vrot.slane %v501_v44, 4  ;;  %v606_v59 = vadd.f32 %v605_v51, %v604_v42  ;;  %v611_v0 = vrot.slane %v610_v55, 1 }
  0xcf   : > { %v575_v29 = vrot.slane %v574_v21, 1  ;;  %v593_v41 = vrot.slane %v592_v33, 1  ;;  %v729_v1 = vmul.f32 %v1731_v43, %v600_v54  ;;  %v620_v7 = vadd.f32 %v619_v63, %v502_v49 }
  0xd0   : > { %v585_v22 = vrot.slane %v584_v13, 2  ;;  %v614_v4 = vadd.f32 %v613_v58, %v501_v44  ;;  %v730_v5 = vmul.f32 %v1731_v43, %v606_v59  ;;  %v625_v8 = vrot.slane %v503_v57, 4 }
  0xd1   : > { %v576_v37 = vadd.f32 %v575_v29, %v574_v21  ;;  %v594_v50 = vadd.f32 %v593_v41, %v592_v33  ;;  %v612_v9 = vadd.f32 %v611_v0, %v610_v55  ;;  %v621_v17 = vrot.slane %v620_v7, 2 }
  0xd2   : > { %v586_v30 = vadd.f32 %v585_v22, %v584_v13  ;;  %v615_v12 = vrot.slane %v614_v4, 2  ;;  %v631_v13 = vrot.slane %v504_v62, 4  ;;  %v626_v18 = vadd.f32 %v625_v8, %v503_v57  ;;  %v510_v57 = vld [vmem:[%s1612_s17 + $0xc8] sm:$0xff] }
  0xd3   : > { %v725_v52 = vmul.f32 %v1731_v43, %v576_v37  ;;  %v728_v60 = vmul.f32 %v1731_v43, %v594_v50  ;;  %v731_v20 = vmul.f32 %v1731_v43, %v612_v9  ;;  %v622_v25 = vadd.f32 %v621_v17, %v620_v7  ;;  %v512_v7 = vld [vmem:[%s1612_s17 + $0xd8] sm:$0xff] }
  0xd4   : > { %v587_v38 = vrot.slane %v586_v30, 1  ;;  %v616_v22 = vadd.f32 %v615_v12, %v614_v4  ;;  %v632_v23 = vadd.f32 %v631_v13, %v504_v62  ;;  %v627_v26 = vrot.slane %v626_v18, 2  ;;  %v513_v12 = vld [vmem:[%s1612_s17 + $0xe0] sm:$0xff] }
  0xd5   : > { %v970_v61 = vsel %vm956_vm3, %v725_v52, %v724_v48  ;;  %v638_v27 = vadd.f32 %v637_v19, %v505_v3  ;;  %v643_v28 = vrot.slane %v506_v11, 4  ;;  %v623_v33 = vrot.slane %v622_v25, 1 }
  0xd6   : > { %1265 = vmatmul.msk.f32.gmra.mxu1 %vm816_vm1, %v803_v40  ;;  %v582_v40 = vadd.f32 %v581_v32, %v580_v24  ;;  %v588_v45 = vadd.f32 %v587_v38, %v586_v30  ;;  %v508_v24 = vld [vmem:[%s1612_s17 + $0xb8] sm:$0xff]  ;;  %v617_v30 = vrot.slane %v616_v22, 1  ;;  %v633_v31 = vrot.slane %v632_v23, 2 }
  0xd7   : > { %v649_v32 = vrot.slane %v507_v16, 4  ;;  %v628_v34 = vadd.f32 %v627_v26, %v626_v18  ;;  %v639_v35 = vrot.slane %v638_v27, 2  ;;  %v644_v36 = vadd.f32 %v643_v28, %v506_v11 }
  0xd8   : > { %v726_v53 = vmul.f32 %v1731_v43, %v582_v40  ;;  %v727_v56 = vmul.f32 %v1731_v43, %v588_v45  ;;  %v618_v37 = vadd.f32 %v617_v30, %v616_v22  ;;  %v634_v38 = vadd.f32 %v633_v31, %v632_v23  ;;  %v509_v45 = vld [vmem:[%s1612_s17 + $0xc0] sm:$0xff] }
  0xd9   : > { %v650_v14 = vadd.f32 %v649_v32, %v507_v16  ;;  %v655_v39 = vrot.slane %v508_v24, 4  ;;  %v624_v40 = vadd.f32 %v623_v33, %v622_v25  ;;  %v629_v41 = vrot.slane %v628_v34, 1  ;;  %v515_v25 = vld [vmem:[%s1612_s17 + $0xf0] sm:$0xff] }
  0xda   : > { %v971_v2 = vsel %vm958_vm4, %v726_v53, %v970_v61  ;;  %v640_v42 = vadd.f32 %v639_v35, %v638_v27  ;;  %v645_v44 = vrot.slane %v644_v36, 2  ;;  %v635_v46 = vrot.slane %v634_v38, 1 }
  0xdb   : > { %v972_v6 = vsel %vm960_vm5, %v727_v56, %v971_v2  ;;  %v651_v47 = vrot.slane %v650_v14, 2  ;;  %v656_v48 = vadd.f32 %v655_v39, %v508_v24  ;;  %v732_v49 = vmul.f32 %v1731_v43, %v618_v37  ;;  %v511_v2 = vld [vmem:[%s1612_s17 + $0xd0] sm:$0xff] }
  0xdc   : > { %v973_v10 = vsel %vm962_vm6, %v728_v60, %v972_v6  ;;  %v630_v50 = vadd.f32 %v629_v41, %v628_v34  ;;  %v641_v51 = vrot.slane %v640_v42, 1  ;;  %v646_v52 = vadd.f32 %v645_v44, %v644_v36  ;;  %v516_v34 = vld [vmem:[%s1612_s17 + $0xf8] sm:$0xff]  ;;  %v1042_v39 = vld [vmem:[%s1933_s9 + $0x30] sm:$0xff] }
  0xdd   : > { %v974_v15 = vsel %vm964_vm7, %v729_v1, %v973_v10  ;;  %v733_v53 = vmul.f32 %v1731_v43, %v624_v40  ;;  %v636_v54 = vadd.f32 %v635_v46, %v634_v38  ;;  %v652_v55 = vadd.f32 %v651_v47, %v650_v14  ;;  %v1043_v14 = vld [vmem:[%s1933_s9 + $0x38] sm:$0xff] }
  0xde   : > { %v975_v21 = vsel %vm966_vm8, %v730_v5, %v974_v15  ;;  %v657_v56 = vrot.slane %v656_v48, 2  ;;  %v661_v58 = vrot.slane %v509_v45, 4  ;;  %v642_v59 = vadd.f32 %v641_v51, %v640_v42  ;;  %1068 = vmatpush.msrb.mxu0 %v1043_v14 }
  0xdf   : > { %v976_v29 = vsel %vm968_vm9, %v731_v20, %v975_v21  ;;  %v647_v60 = vrot.slane %v646_v52, 1  ;;  %v734_v61 = vmul.f32 %v1731_v43, %v630_v50  ;;  %v977_v62 = vsel %vm956_vm3, %v733_v53, %v732_v49  ;;  %v514_v21 = vld [vmem:[%s1612_s17 + $0xe8] sm:$0xff]  ;;  %s1284_s17 = sshll.u32 %s1543_s29, 5 }
  0xe0   : > { %1014 = vmatmul.f32.gmra.mxu3 %v976_v29  ;;  %v653_v63 = vrot.slane %v652_v55, 1  ;;  %v658_v0 = vadd.f32 %v657_v56, %v656_v48  ;;  %v735_v1 = vmul.f32 %v1731_v43, %v636_v54  ;;  %v662_v3 = vadd.f32 %v661_v58, %v509_v45  ;;  %v1808_v29 = vld [vmem:[%s1929_s5] ss:$0 sm:$0xff]  ;;  %v1041_v49 = vld [vmem:[%s1933_s9 + $0x28] sm:$0xff]  ;;  %1069 = vmatpush.msrb.mxu0 %v1042_v39  ;;  %v1038_v39 = vld [vmem:[%s1933_s9 + $0x10] sm:$0xff]  ;;  %s1158_s21 = scalar_lea.hbm %s1961_s20, %s1284_s17 }
  0xe1   : > { %v648_v4 = vadd.f32 %v647_v60, %v646_v52  ;;  %v736_v5 = vmul.f32 %v1731_v43, %v642_v59  ;;  %v978_v6 = vsel %vm958_vm4, %v734_v61, %v977_v62  ;;  %v667_v8 = vrot.slane %v510_v57, 4  ;;  %v1040_v59 = vld [vmem:[%s1933_s9 + $0x20] sm:$0xff]  ;;  %s1161_s25 = sshll.u32 %s1158_s21, 4  ;;  %s1162_s25 = int_to_ptr.hbm [resolvable:$true] %s1161_s25 }
  0xe2   : > { %v654_v9 = vadd.f32 %v653_v63, %v652_v55  ;;  %v659_v10 = vrot.slane %v658_v0, 1  ;;  %v979_v11 = vsel %vm960_vm5, %v735_v1, %v978_v6  ;;  %v663_v13 = vrot.slane %v662_v3, 2  ;;  %1070 = vmatpush.msrb.mxu0 %v1041_v49  ;;  %v1095_v49 = vld [vmem:[%s1935_s11 + $0x10] sm:$0xff]  ;;  %s1393_s14 = sshra.s32 %s1162_s25, 4  ;;  %s1394_s14 = int_to_ptr.hbm [resolvable:$true] %s1393_s14 }
  0xe3   : > { %v737_v15 = vmul.f32 %v1731_v43, %v648_v4  ;;  %v980_v16 = vsel %vm962_vm6, %v736_v5, %v979_v11  ;;  %v668_v17 = vadd.f32 %v667_v8, %v510_v57  ;;  %v673_v18 = vrot.slane %v511_v2, 4  ;;  %s1395_s18 = scalar_lea.hbm %s1394_s14, 32  ;;  %p1400_p1 = scmp.lt.s32.totalorder %s1394_s14, %s1961_s20 }
  0xe4   : > { %v660_v19 = vadd.f32 %v659_v10, %v658_v0  ;;  %v738_v20 = vmul.f32 %v1731_v43, %v654_v9  ;;  %v664_v22 = vadd.f32 %v663_v13, %v662_v3  ;;  %v679_v23 = vrot.slane %v512_v7, 4  ;;  %1071 = vmatpush.msrb.mxu0 %v1040_v59  ;;  %p1396_p6 = scmp.ne.s32.totalorder %s1394_s14, %s1395_s18  ;;  %p1401_p3 = scmp.lt.s32.totalorder %s1399_s15, %s1395_s18 }
  0xe5   : > { %v981_v24 = vsel %vm964_vm7, %v737_v15, %v980_v16  ;;  %v669_v26 = vrot.slane %v668_v17, 2  ;;  %v674_v27 = vadd.f32 %v673_v18, %v511_v2  ;;  %v685_v28 = vrot.slane %v513_v12, 4 }
  0xe6   : > { %v739_v30 = vmul.f32 %v1731_v43, %v660_v19  ;;  %v982_v31 = vsel %vm966_vm8, %v738_v20, %v981_v24  ;;  %v665_v32 = vrot.slane %v664_v22, 1  ;;  %v680_v33 = vadd.f32 %v679_v23, %v512_v7  ;;  %p1397_p13 = pnand %p1396_p6, %p1572_p11  ;;  %p1402_p4 = por %p1401_p3, %p1400_p1 }
  0xe7   : > { %v670_v35 = vadd.f32 %v669_v26, %v668_v17  ;;  %v675_v36 = vrot.slane %v674_v27, 2  ;;  %v686_v37 = vadd.f32 %v685_v28, %v513_v12  ;;  %v691_v38 = vrot.slane %v514_v21, 4 }
  0xe8   : > { %v983_v40 = vsel %vm968_vm9, %v739_v30, %v982_v31  ;;  %v666_v41 = vadd.f32 %v665_v32, %v664_v22  ;;  %v681_v42 = vrot.slane %v680_v33, 2  ;;  %v697_v44 = vrot.slane %v515_v25, 4  ;;  %p1398_p0 = pneg %p1397_p13 }
  0xe9   : > { %1017 = vmatmul.f32.gmra.mxu3 %v983_v40  ;;  %v671_v45 = vrot.slane %v670_v35, 1  ;;  %v676_v46 = vadd.f32 %v675_v36, %v674_v27  ;;  %v687_v47 = vrot.slane %v686_v37, 2  ;;  %v692_v48 = vadd.f32 %v691_v38, %v514_v21  ;;  %v1037_v40 = vld [vmem:[%s1933_s9 + $0x8] sm:$0xff] }
  0xea   : > { %v682_v51 = vadd.f32 %v681_v42, %v680_v33  ;;  %v698_v52 = vadd.f32 %v697_v44, %v515_v25  ;;  %v703_v53 = vrot.slane %v516_v34, 4  ;;  %v740_v54 = vmul.f32 %v1731_v43, %v666_v41  ;;  %v1344_v42 = vld [vmem:[%s1932_s8] ss:$0 sm:$0xff]  ;;  %p1403_p7 = pnand %p1402_p4, %p1398_p0 }
  0xeb   : > { %v672_v56 = vadd.f32 %v671_v45, %v670_v35  ;;  %v677_v57 = vrot.slane %v676_v46, 1  ;;  %v688_v58 = vadd.f32 %v687_v47, %v686_v37  ;;  %v693_v61 = vrot.slane %v692_v48, 2 }
  0xec   : > { %v683_v60 = vrot.slane %v682_v51, 1  ;;  %v699_v62 = vrot.slane %v698_v52, 2  ;;  %v704_v63 = vadd.f32 %v703_v53, %v516_v34 }
  0xed   : > { %v678_v1 = vadd.f32 %v677_v57, %v676_v46  ;;  %v689_v2 = vrot.slane %v688_v58, 1  ;;  %v741_v3 = vmul.f32 %v1731_v43, %v672_v56  ;;  %v694_v5 = vadd.f32 %v693_v61, %v692_v48  ;;  %v1096_v48 = vld [vmem:[%s1935_s11 + $0x18] sm:$0xff] }
  0xee   : > { %v684_v4 = vadd.f32 %v683_v60, %v682_v51  ;;  %v700_v6 = vadd.f32 %v699_v62, %v698_v52  ;;  %v705_v7 = vrot.slane %v704_v63, 2  ;;  %1125 = vmatpush.msrb.mxu2 %v1096_v48 }
  0xef   : > { %v690_v8 = vadd.f32 %v689_v2, %v688_v58  ;;  %v742_v9 = vmul.f32 %v1731_v43, %v678_v1  ;;  %v984_v10 = vsel %vm956_vm3, %v741_v3, %v740_v54  ;;  %v695_v11 = vrot.slane %v694_v5, 1  ;;  %v1093_v2 = vld [vmem:[%s1935_s11] sm:$0xff] }
  0xf0   : > { %v701_v12 = vrot.slane %v700_v6, 1  ;;  %v706_v13 = vadd.f32 %v705_v7, %v704_v63  ;;  %v743_v15 = vmul.f32 %v1731_v43, %v684_v4  ;;  %1126 = vmatpush.msrb.mxu2 %v1095_v49  ;;  %v1345_v3 = vld [vmem:[%s1934_s10] ss:$0 sm:$0xff] }
  0xf1   : > { %v744_v16 = vmul.f32 %v1731_v43, %v690_v8  ;;  %v985_v17 = vsel %vm958_vm4, %v742_v9, %v984_v10  ;;  %v696_v19 = vadd.f32 %v695_v11, %v694_v5 }
  0xf2   : > { %v702_v20 = vadd.f32 %v701_v12, %v700_v6  ;;  %v707_v21 = vrot.slane %v706_v13, 1  ;;  %v986_v22 = vsel %vm960_vm5, %v743_v15, %v985_v17  ;;  %v1346_v17 = vld [vmem:[%s1936_s12] ss:$0 sm:$0xff] }
  0xf3   : > { %v987_v24 = vsel %vm962_vm6, %v744_v16, %v986_v22  ;;  %v745_v26 = vmul.f32 %v1731_v43, %v696_v19 }
  0xf4   : > { %v708_v25 = vadd.f32 %v707_v21, %v706_v13  ;;  %v746_v27 = vmul.f32 %v1731_v43, %v702_v20 }
  0xf5   : > { %v988_v31 = vsel %vm964_vm7, %v745_v26, %v987_v24 }
  0xf6   : > { %v747_v30 = vmul.f32 %v1731_v43, %v708_v25  ;;  %v989_v32 = vsel %vm966_vm8, %v746_v27, %v988_v31  ;;  %v1039_v43 = vld [vmem:[%s1933_s9 + $0x18] sm:$0xff] }
  0xf7   : > { %1072 = vmatpush.msrb.mxu0 %v1039_v43 }
  0xf8   : > { %v990_v33 = vsel %vm968_vm9, %v747_v30, %v989_v32 }
  0xf9   : > { %1020 = vmatmul.f32.gmra.mxu3 %v990_v33  ;;  %1073 = vmatpush.msrb.mxu0 %v1038_v39 }
  0xfb   : > { %1074 = vmatpush.msrb.mxu0 %v1037_v40 }
 0x13b   : > { %v846_v50 = vpop.f32.mrf.mxu1 }
 0x13c   : > { %v847_v55 = vadd.f32 %v1808_v29, %v846_v50  ;;  %v1094_v50 = vld [vmem:[%s1935_s11 + $0x8] sm:$0xff] }
 0x13d   : > { %1127 = vmatpush.msrb.mxu2 %v1094_v50 }
 0x13e   : > { %v858_v0 = vmax.f32 %v847_v55, 0.0 }
 0x13f   : > { %1128 = vmatpush.msrb.mxu2 %v1093_v2 }
 0x140   : > { %1266 = vmatmul.msk.f32.vlgmr.msra.gmra.mxu1 %vm882_vm10, %v858_v0 }
 0x143   : > { %v849_v18 = vpop.f32.mrf.mxu1 }
 0x144   : > { %v850_v23 = vadd.f32 %v1808_v29, %v849_v18 }
 0x146   : > { %v859_v28 = vmax.f32 %v850_v23, 0.0 }
 0x148   : > { %1267 = vmatmul.msk.f32.vlgmr.msra.gmra.mxu2 %vm882_vm10, %v859_v28 }
 0x14b   : > { %v852_v34 = vpop.f32.mrf.mxu1 }
 0x14c   : > { %v853_v35 = vadd.f32 %v1808_v29, %v852_v34 }
 0x14e   : > { %v860_v36 = vmax.f32 %v853_v35, 0.0 }
 0x150   : > { %1268 = vmatmul.msk.f32.gmra.mxu2 %vm882_vm10, %v860_v36 }
 0x151   : > { %v1012_v41 = vpop.f32.mrf.mxu3 }
 0x153   : > { %v855_v37 = vpop.f32.mrf.mxu1 }
 0x154   : > { %v856_v38 = vadd.f32 %v1808_v29, %v855_v37  ;;  %v1036_v29 = vld [vmem:[%s1933_s9] sm:$0xff] }
 0x155   : > { %1075 = vmatpush.msrb.mxu0 %v1036_v29 }
 0x156   : > { %v861_v14 = vmax.f32 %v856_v38, 0.0 }
 0x158   : > { %1269 = vmatmul.msk.f32.gmra.mxu2 %vm882_vm10, %v861_v14 }
 0x163   : > { %v1015_v51 = vpop.f32.mrf.mxu3 }
 0x16c   : > { %v1018_v55 = vpop.f32.mrf.mxu3 }
 0x17c   : > { %v1021_v61 = vpop.f32.mrf.mxu3 }
 0x1bd   : > { %v912_v44 = vpop.f32.mrf.mxu1 }
 0x1be   : > { %v1013_v45 = vadd.f32 %v1012_v41, %v912_v44 }
 0x1c0   : > { %v1028_v46 = vadd.f32 %v1344_v42, %v1013_v45 }
 0x1c2   : > { %v1032_v47 = vmax.f32 %v1028_v46, 0.0 }
 0x1c4   : > { %1270 = vmatmul.msk.f32.vlgmr.msrb.gmra.mxu0 %vm816_vm1, %v1032_v47 }
 0x1cb   : > { %v915_v52 = vpop.f32.mrf.mxu2 }
 0x1cc   : > { %v1016_v53 = vadd.f32 %v1015_v51, %v915_v52 }
 0x1ce   : > { %v1029_v54 = vadd.f32 %v1344_v42, %v1016_v53 }
 0x1d0   : > { %v1033_v56 = vmax.f32 %v1029_v54, 0.0 }
 0x1d2   : > { %1271 = vmatmul.msk.f32.gmra.mxu0 %vm816_vm1, %v1033_v56 }
 0x1d3   : > { %v918_v57 = vpop.f32.mrf.mxu2 }
 0x1d4   : > { %v1019_v58 = vadd.f32 %v1018_v55, %v918_v57 }
 0x1d6   : > { %v1030_v59 = vadd.f32 %v1344_v42, %v1019_v58 }
 0x1d8   : > { %v1034_v60 = vmax.f32 %v1030_v59, 0.0 }
 0x1da   : > { %1272 = vmatmul.msk.f32.gmra.mxu0 %vm816_vm1, %v1034_v60 }
 0x1db   : > { %v921_v62 = vpop.f32.mrf.mxu2 }
 0x1dc   : > { %v1022_v63 = vadd.f32 %v1021_v61, %v921_v62 }
 0x1de   : > { %v1031_v0 = vadd.f32 %v1344_v42, %v1022_v63 }
 0x1e0   : > { %v1035_v1 = vmax.f32 %v1031_v0, 0.0 }
 0x1e2   : > { %1273 = vmatmul.msk.f32.gmra.mxu0 %vm816_vm1, %v1035_v1 }
 0x241   : > { %v1077_v4 = vpop.f32.mrf.mxu0 }
 0x242   : > { %v1078_v5 = vadd.f32 %v1345_v3, %v1077_v4 }
 0x244   : > { %v1089_v6 = vmax.f32 %v1078_v5, 0.0 }
 0x246   : > { %1274 = vmatmul.msk.f32.vlgmr.msrb.gmra.mxu2 %vm882_vm10, %v1089_v6 }
 0x24f   : > { %v1080_v7 = vpop.f32.mrf.mxu0 }
 0x250   : > { %v1081_v8 = vadd.f32 %v1345_v3, %v1080_v7 }
 0x252   : > { %v1090_v9 = vmax.f32 %v1081_v8, 0.0 }
 0x254   : > { %1275 = vmatmul.msk.f32.gmra.mxu2 %vm882_vm10, %v1090_v9 }
 0x257   : > { %v1083_v10 = vpop.f32.mrf.mxu0 }
 0x258   : > { %v1084_v11 = vadd.f32 %v1345_v3, %v1083_v10 }
 0x25a   : > { %v1091_v12 = vmax.f32 %v1084_v11, 0.0 }
 0x25c   : > { %1276 = vmatmul.msk.f32.gmra.mxu2 %vm882_vm10, %v1091_v12 }
 0x25f   : > { %v1086_v13 = vpop.f32.mrf.mxu0 }
 0x260   : > { %v1087_v15 = vadd.f32 %v1345_v3, %v1086_v13 }
 0x262   : > { %v1092_v16 = vmax.f32 %v1087_v15, 0.0 }
 0x264   : > { %1277 = vmatmul.msk.f32.gmra.mxu2 %vm882_vm10, %v1092_v16 }
 0x2c9   : > { %v1130_v18 = vpop.f32.mrf.mxu2 }
 0x2ca   : > { %v1131_v19 = vadd.f32 %v1346_v17, %v1130_v18 }
 0x2cc   : > { %1142 = vst [vmem:[%s476_s22] sm:$0xff] %v1131_v19 }
 0x2d7   : > { %v1133_v20 = vpop.f32.mrf.mxu2 }
 0x2d8   : > { %v1134_v21 = vadd.f32 %v1346_v17, %v1133_v20 }
 0x2da   : > { %1143 = vst [vmem:[%s476_s22 + $0x8] sm:$0xff] %v1134_v21 }
 0x2df   : > { %v1136_v22 = vpop.f32.mrf.mxu2 }
 0x2e0   : > { %v1137_v23 = vadd.f32 %v1346_v17, %v1136_v22 }
 0x2e2   : > { %1144 = vst [vmem:[%s476_s22 + $0x10] sm:$0xff] %v1137_v23 }
 0x2e7   : > { %v1139_v24 = vpop.f32.mrf.mxu2 }
 0x2e8   : > { %v1140_v25 = vadd.f32 %v1346_v17, %v1139_v24 }
 0x2ea   : > { %1145 = vst [vmem:[%s476_s22 + $0x18] sm:$0xff] %v1140_v25 }
 0x2eb   : > { %1406 = shalt.err (!%p1403_p7)
}
 0x2ec   : > { %s1450_s30 = smov 128   ;;  %s1451_s22 = smov 8  }
 0x2ed   : > { %1293 = dma.vmem_to_hbm [thread:$0]  (%p1572_p11), %s1160_s13, 512, %s1162_s25, %s1147_s27, %s1450_s30, %s1450_s30, %s1451_s22  }
 0x2ee PF: > { %s1962_s23 = sld [smem:[#allocation8_spill]]  ;;  %p1964_p5 = scmp.ge.s32.totalorder %s1445_s28, 2 }
 0x2f0   : > { %p1300_p8 = pnand %p1964_p5, %p1576_p12 }
 0x2f2   : > { %p1301_p10 = pneg %p1300_p8 }
 0x2f4   : > { %s1176_s0 = sand.u32 1, %s1962_s23  }
 0x2f5   : > { %s1177_s29 = scalar_lea.sflag [#allocation4], %s1176_s0 }
 0x2f6   : > { %1428 = dma.done.wait (%p1301_p10), %s1177_s29, 512  }
 0x2f7   : > { %1430 = vsyncadd (%p1301_p10), %s1177_s29, 4294966784  ;;  %s1965_s28 = sld [smem:[#allocation10_spill]]  ;;  %s1968_s25 = smov %s1437_s26 }
 0x2f8   : > { %s1966_s14 = sld [smem:[#allocation9_spill]] }
 0x2f9   : > { %s1967_s27 = sld [smem:[#allocation11_spill]] }
 0x2fd   : > { %p26_p2 = scmp.ge.s32.totalorder %s1965_s28, 4  }
 0x2fe   : > { %s1969_s26 = smov %s1966_s14 }
 0x2ff   :  { %28 = sbr.rel (!%p26_p2) target bundleno = 8 (0x8), region = 120 }
 0x304   :  { %1183 = vsyncpa [#allocation3], 1 }
 0x305   :  { %1185 = vsyncpa [#allocation3 + $0x1], 1 }
 0x306   :  { %1186 = vsyncpa [#allocation4], 1 }
 0x307   :  { %1188 = vsyncpa [#allocation4 + $0x1], 1 }

// kernel: tpu_custom_call.1
= control target key start
LH: loop header
LB: loop body
LE: loop exit
PB: predicated region body
PF: predicated region fallthrough
CT: control target
= control target key end

     0   :  { %s1924_s0 = inlined_call_operand.hbm [shape: f32[64,8,128], index: 0, kind: input, shape index: {}]   ;;  %s1925_s1 = inlined_call_operand.vmem [shape: f32[64,16], index: 1, kind: input, shape index: {}]   ;;  %s1926_s2 = inlined_call_operand.vmem [shape: f32[16,64], index: 2, kind: input, shape index: {}]   ;;  %s1927_s3 = inlined_call_operand.vmem [shape: f32[1,64], index: 3, kind: input, shape index: {}]   ;;  %s1928_s4 = inlined_call_operand.vmem [shape: f32[64,32], index: 4, kind: input, shape index: {}]   ;;  %s1929_s5 = inlined_call_operand.vmem [shape: f32[1,32], index: 5, kind: input, shape index: {}]   ;;  %s1930_s6 = inlined_call_operand.vmem [shape: f32[128,64], index: 6, kind: input, shape index: {}]   ;;  %s1931_s7 = inlined_call_operand.vmem [shape: f32[32,64], index: 7, kind: input, shape index: {}]   ;;  %s1932_s8 = inlined_call_operand.vmem [shape: f32[1,64], index: 8, kind: input, shape index: {}]   ;;  %s1933_s9 = inlined_call_operand.vmem [shape: f32[64,32], index: 9, kind: input, shape index: {}]   ;;  %s1934_s10 = inlined_call_operand.vmem [shape: f32[1,32], index: 10, kind: input, shape index: {}]   ;;  %s1935_s11 = inlined_call_operand.vmem [shape: f32[32,128], index: 11, kind: input, shape index: {}]   ;;  %s1936_s12 = inlined_call_operand.vmem [shape: f32[1,128], index: 12, kind: input, shape index: {}]   ;;  %s1937_s13 = inlined_call_operand.hbm [shape: f32[64,128], index: 13, kind: output, shape index: {}]  }
   0x1   :  { %1946 = sst [smem:[#allocation14_spill]] %s1924_s0 }
   0x2   :  { %1947 = sst [smem:[#allocation15_spill]] %s1937_s13 }
   0x3   :  { %18 = vsyncpa [#allocation3], 0 }
   0x4   :  { %20 = vsyncpa [#allocation3 + $0x1], 0 }
   0x5   :  { %21 = vsyncpa [#allocation4], 0 }
   0x6   :  { %23 = vsyncpa [#allocation4 + $0x1], 0  ;;  %s1522_s25 = smov 0   ;;  %s1524_s26 = smov 0  }
   0x7   :  { %s1526_s27 = smov 0   ;;  %s1528_s28 = smov 0  }
   0x8 LB: > { %1948 = sst [smem:[#allocation8_spill]] %s1433_s25  ;;  %s1543_s29 = sadd.s32 4294967295, %s1445_s28   ;;  %s1445_s28 = sphi %s1528_s28, %s1965_s28   ;;  %s1441_s27 = sphi %s1526_s27, %s1967_s27   ;;  %s1437_s26 = sphi %s1524_s26, %s1969_s26   ;;  %s1433_s25 = sphi %s1522_s25, %s1968_s25  }
   0x9   : > { %1949 = sst [smem:[#allocation9_spill]] %s1441_s27  ;;  %s1247_s30 = sadd.s32 4294967294, %s1445_s28  }
   0xa   : > { %s1547_s14 = sadd.s32 1, %s1445_s28   ;;  %s36_s15 = sadd.s32 1, %s1441_s27 }
   0xb   : > { %1950 = sst [smem:[#allocation10_spill]] %s1547_s14  ;;  %s33_s16 = ssub.s32 %s1445_s28, %s1547_s14 }
   0xc   : > { %p43_p0 = scmp.ne.s32.totalorder %s1441_s27, %s1437_s26  ;;  %p34_p1 = scmp.eq.s32.totalorder %s33_s16, 0 }
   0xd   : > { %p44_p2 = scmp.eq.s32.totalorder %s1445_s28, 0  ;;  %p49_p3 = scmp.ne.s32.totalorder %s1437_s26, %s1433_s25 }
   0xe   : > { %p50_p4 = scmp.eq.s32.totalorder %s1543_s29, 0  ;;  %p330_p7 = scmp.eq.s32.totalorder %s1543_s29, 1 }
   0xf   : > { %s1559_s17 = scalar_select %p34_p1, %s1441_s27, %s36_s15  }
  0x10   : > { %p1561_p5 = por %p44_p2, %p43_p0  ;;  %p1565_p6 = por %p50_p4, %p49_p3 }
  0x11   : > { %1951 = sst [smem:[#allocation11_spill]] %s1559_s17  ;;  %p336_p8 = scmp.eq.s32.totalorder %s1247_s30, 1 }
  0x12   : > { %p1303_p10 = scmp.lt.s32.totalorder %s1445_s28, 2  ;;  %p1572_p11 = por %p330_p7, %p43_p0 }
  0x13   : > { %p1576_p12 = por %p336_p8, %p49_p3  ;;  %s389_s22 = sand.u32 1, %s1441_s27  }
  0x14   : > { %s1954_s20 = scalar_select %p1572_p11, 1, 0 }
  0x15   : > { %s1956_s21 = scalar_select %p1576_p12, 1, 0 }
  0x16   : > { %1955 = sst [smem:[#allocation12_spill]] %s1954_s20  ;;  %s1283_s23 = sshll.u32 %s1445_s28, 8 }
  0x17   : > { %1957 = sst [smem:[#allocation13_spill]] %s1956_s21  ;;  %s1250_s24 = sshll.u32 %s389_s22, 8 }
  0x18   : > { %s1958_s0 = sld [smem:[#allocation14_spill]]  ;;  %s393_s30 = scalar_lea.vmem [#allocation2], %s1250_s24 }
  0x19   : > { %s401_s25 = sshll.u32 %s393_s30, 4  ;;  %p1587_p13 = pnand %p1303_p10, %p1561_p5  ;;  %s402_s25 = int_to_ptr.vmem [resolvable:$true] %s401_s25 }
  0x1a   : > { %p1253_p0 = scmp.ge.s32.totalorder %s1445_s28, 1  ;;  %p418_p1 = scmp.lt.s32.totalorder %s1445_s28, 3 }
  0x1b   : > { %s390_s27 = scalar_lea.sflag [#allocation3], %s389_s22  ;;  %p1353_p3 = pneg %p1587_p13 }
  0x1e   : > { %s398_s17 = scalar_lea.hbm %s1958_s0, %s1283_s23  ;;  %s1356_s18 = scalar_lea.hbm %s1958_s0, 512 }
  0x1f   : > { %s399_s14 = sshll.u32 %s398_s17, 4  ;;  %s400_s14 = int_to_ptr.hbm [resolvable:$true] %s399_s14 }
  0x20   : > { %s1349_s21 = sshra.s32 %s400_s14, 4  ;;  %s1350_s21 = int_to_ptr.hbm [resolvable:$true] %s1349_s21 }
  0x21   : > { %s1351_s20 = scalar_lea.hbm %s1350_s21, 256  ;;  %p1357_p5 = scmp.lt.s32.totalorder %s1350_s21, %s1958_s0 }
  0x22   : > { %p1352_p2 = scmp.ne.s32.totalorder %s1350_s21, %s1351_s20  ;;  %p1358_p8 = scmp.lt.s32.totalorder %s1356_s18, %s1351_s20 }
  0x24   : > { %p1354_p4 = pnand %p1353_p3, %p1352_p2  ;;  %p1359_p10 = por %p1358_p8, %p1357_p5 }
  0x26   : > { %p1355_p7 = pneg %p1354_p4 }
  0x28   : > { %p1360_p9 = pnand %p1359_p10, %p1355_p7 }
  0x2a   : > { %1363 = shalt.err (!%p1360_p9)
}
  0x2b   : > { %s1447_s22 = smov 128   ;;  %s1448_s16 = smov 8  }
  0x2c   : > { %1298 = dma.hbm_to_vmem [thread:$0]  (!%p1587_p13), %s400_s14, 4096, %s402_s25, %s390_s27, %s1447_s22, %s1447_s22, %s1448_s16  }
  0x2d   : > { %p419_p2 = pnand %p1253_p0, %p418_p1 }
  0x2e   : > { %s1608_s30 = sand.u32 (!%p419_p2), 1, %s1437_s26  }
  0x2f   : > { %422 = sbr.rel (%p419_p2) target bundleno = 750 (0x2ee), region = 72  ;;  %s1254_s20 = sshll.u32 (!%p419_p2), %s1608_s30, 8 }
  0x30   : > { %s425_s21 = scalar_lea.sflag (!%p419_p2), [#allocation3], %s1608_s30  ;;  %s1612_s17 = scalar_lea.vmem (!%p419_p2), [#allocation2], %s1254_s20 }
  0x34   : > { %1424 = dma.done.wait (%p1565_p6), %s425_s21, 4096  }
  0x35   : > { %1426 = vsyncadd (%p1565_p6), %s425_s21, 4294963200  ;;  %s1256_s13 = sshll.u32 %s1543_s29, 2  ;;  %v753_v0 = vld [vmem:[%s1926_s2 + $0x8] sm:$0xff]  ;;  %v752_v1 = vld [vmem:[%s1926_s2] sm:$0xff]  ;;  %vm758_vm0 = vcmask 130048   ;;  %vm816_vm1 = vcmask 523264  }
  0x36   : > { %p479_p9 = scmp.lt.s32.totalorder %s1256_s13, 7  ;;  %785 = vmatpush.msra.mxu0 %v753_v0  ;;  %1285 = vmatpush.msra.mxu1 %v753_v0  ;;  %v811_v4 = vld [vmem:[%s1928_s4 + $0x38] sm:$0xff]  ;;  %v810_v5 = vld [vmem:[%s1928_s4 + $0x30] sm:$0xff]  ;;  %v809_v6 = vld [vmem:[%s1928_s4 + $0x28] sm:$0xff]  ;;  %v1449_v49 = vmov 8.0   ;;  %vm956_vm3 = vcmask 1041409  }
  0x37   : > { %v808_v7 = vld [vmem:[%s1928_s4 + $0x20] sm:$0xff]  ;;  %v807_v10 = vld [vmem:[%s1928_s4 + $0x18] sm:$0xff]  ;;  %v806_v11 = vld [vmem:[%s1928_s4 + $0x10] sm:$0xff]  ;;  %1347 = vrcp.f32 %v1449_v49  ;;  %vm958_vm4 = vcmask 1042434   ;;  %vm960_vm5 = vcmask 1043459   ;;  %vm962_vm6 = vcmask 1044484  }
  0x38   : > { %s1971_s13 = smov (!%p479_p9, %s1256_s13), 7  ;;  %786 = vmatpush.msra.mxu0 %v752_v1  ;;  %1286 = vmatpush.msra.mxu1 %v752_v1  ;;  %v805_v12 = vld [vmem:[%s1928_s4 + $0x8] sm:$0xff]  ;;  %v804_v13 = vld [vmem:[%s1928_s4] sm:$0xff]  ;;  %v877_v15 = vld [vmem:[%s1930_s6 + $0x78] sm:$0xff]  ;;  %vm964_vm7 = vcmask 1045509   ;;  %vm966_vm8 = vcmask 1046534  }
  0x39   : > { %s1257_s25 = sshll.u32 %s1971_s13, 3  ;;  %v1659_v14 = vld [vmem:[%s1927_s3] ss:$0 sm:$0xff]  ;;  %v876_v16 = vld [vmem:[%s1930_s6 + $0x70] sm:$0xff]  ;;  %995 = vmatpush.msra.mxu3 %v877_v15  ;;  %v875_v17 = vld [vmem:[%s1930_s6 + $0x68] sm:$0xff]  ;;  %vm968_vm9 = vcmask 1047559  }
  0x3a   : > { %s482_s23 = scalar_lea.vmem %s1925_s1, %s1257_s25  ;;  %837 = vmatpush.msrb.mxu1 %v811_v4  ;;  %v881_v18 = vld [vmem:[%s1931_s7 + $0x18] sm:$0xff]  ;;  %v880_v20 = vld [vmem:[%s1931_s7 + $0x10] sm:$0xff]  ;;  %v874_v22 = vld [vmem:[%s1930_s6 + $0x60] sm:$0xff]  ;;  %vm882_vm10 = vcmask 261120   ;;  %s1255_s18 = sshll.u32 %s1608_s30, 5 }
  0x3b   : > { %v748_v2 = vld [vmem:[%s482_s23] sm:$0xff]  ;;  %v750_v3 = vld [vmem:[%s482_s23 + $0x10] sm:$0xff]  ;;  %v749_v8 = vld [vmem:[%s482_s23 + $0x8] sm:$0xff]  ;;  %996 = vmatpush.msra.mxu3 %v876_v16  ;;  %1287 = vmatpush.msra.mxu2 %v881_v18  ;;  %s476_s22 = scalar_lea.vmem [#allocation5], %s1255_s18  ;;  %s1961_s20 = sld [smem:[#allocation15_spill]] }
  0x3c   : > { %1258 = vmatmul.msk.f32.vlgmr.msra.gmra.mxu0 %vm758_vm0, %v748_v2  ;;  %1260 = vmatmul.msk.f32.vlgmr.msra.gmra.mxu1 %vm758_vm0, %v750_v3  ;;  %v751_v9 = vld [vmem:[%s482_s23 + $0x18] sm:$0xff]  ;;  %v879_v24 = vld [vmem:[%s1931_s7 + $0x8] sm:$0xff]  ;;  %v872_v26 = vld [vmem:[%s1930_s6 + $0x50] sm:$0xff]  ;;  %s1159_s13 = sshll.u32 %s476_s22, 4  ;;  %s1147_s27 = scalar_lea.sflag [#allocation4], %s1608_s30  ;;  %s1160_s13 = int_to_ptr.vmem [resolvable:$true] %s1159_s13 }
  0x3d   : > { %838 = vmatpush.msrb.mxu1 %v810_v5  ;;  %997 = vmatpush.msra.mxu3 %v875_v17  ;;  %v873_v23 = vld [vmem:[%s1930_s6 + $0x58] sm:$0xff]  ;;  %v485_v27 = vld [vmem:[%s1612_s17] sm:$0xff]  ;;  %v486_v28 = vld [vmem:[%s1612_s17 + $0x8] sm:$0xff]  ;;  %v1348_v3 = vpop.eup %1347 }
  0x3e   : > { %1288 = vmatpush.msra.mxu2 %v880_v20  ;;  %v487_v29 = vld [vmem:[%s1612_s17 + $0x10] sm:$0xff]  ;;  %v488_v30 = vld [vmem:[%s1612_s17 + $0x18] sm:$0xff]  ;;  %v489_v31 = vld [vmem:[%s1612_s17 + $0x20] sm:$0xff]  ;;  %v517_v32 = vrot.slane %v485_v27, 4  ;;  %v523_v33 = vrot.slane %v486_v28, 4  ;;  %v710_v17 = vmul.f32 8.0, %v1348_v3  ;;  %vm714_vm2 = vweird.f32 %v1348_v3 }
  0x3f   : > { %839 = vmatpush.msrb.mxu1 %v809_v6  ;;  %998 = vmatpush.msra.mxu3 %v874_v22  ;;  %v490_v34 = vld [vmem:[%s1612_s17 + $0x28] sm:$0xff]  ;;  %v491_v35 = vld [vmem:[%s1612_s17 + $0x30] sm:$0xff]  ;;  %v492_v36 = vld [vmem:[%s1612_s17 + $0x38] sm:$0xff]  ;;  %v529_v37 = vrot.slane %v487_v29, 4  ;;  %v535_v38 = vrot.slane %v488_v30, 4  ;;  %v541_v39 = vrot.slane %v489_v31, 4 }
  0x40   : > { %1289 = vmatpush.msra.mxu2 %v879_v24  ;;  %v518_v40 = vadd.f32 %v517_v32, %v485_v27  ;;  %v524_v41 = vadd.f32 %v523_v33, %v486_v28  ;;  %v547_v42 = vrot.slane %v490_v34, 4  ;;  %v553_v43 = vrot.slane %v491_v35, 4  ;;  %v871_v45 = vld [vmem:[%s1930_s6 + $0x48] sm:$0xff]  ;;  %v870_v56 = vld [vmem:[%s1930_s6 + $0x40] sm:$0xff]  ;;  %v869_v62 = vld [vmem:[%s1930_s6 + $0x38] sm:$0xff] }
  0x41   : > { %840 = vmatpush.msrb.mxu1 %v808_v7  ;;  %999 = vmatpush.msra.mxu3 %v873_v23  ;;  %v530_v46 = vadd.f32 %v529_v37, %v487_v29  ;;  %v536_v47 = vadd.f32 %v535_v38, %v488_v30  ;;  %v542_v48 = vadd.f32 %v541_v39, %v489_v31  ;;  %v559_v54 = vrot.slane %v492_v36, 4  ;;  %v868_v4 = vld [vmem:[%s1930_s6 + $0x30] sm:$0xff]  ;;  %s1399_s15 = scalar_lea.hbm %s1961_s20, 64 }
  0x42   : > { %v519_v51 = vrot.slane %v518_v40, 2  ;;  %v525_v52 = vrot.slane %v524_v41, 2  ;;  %v548_v53 = vadd.f32 %v547_v42, %v490_v34  ;;  %v554_v59 = vadd.f32 %v553_v43, %v491_v35  ;;  %v864_v32 = vld [vmem:[%s1930_s6 + $0x10] sm:$0xff] }
  0x43   : > { %841 = vmatpush.msrb.mxu1 %v807_v10  ;;  %1000 = vmatpush.msra.mxu3 %v872_v26  ;;  %v531_v57 = vrot.slane %v530_v46, 2  ;;  %v537_v58 = vrot.slane %v536_v47, 2  ;;  %v543_v60 = vrot.slane %v542_v48, 2  ;;  %v867_v10 = vld [vmem:[%s1930_s6 + $0x28] sm:$0xff]  ;;  %v865_v26 = vld [vmem:[%s1930_s6 + $0x18] sm:$0xff] }
  0x44   : > { %1259 = vmatmul.msk.f32.gmra.mxu0 %vm758_vm0, %v749_v8  ;;  %1261 = vmatmul.msk.f32.gmra.mxu1 %vm758_vm0, %v751_v9  ;;  %v549_v63 = vrot.slane %v548_v53, 2  ;;  %v520_v1 = vadd.f32 %v519_v51, %v518_v40  ;;  %v526_v2 = vadd.f32 %v525_v52, %v524_v41  ;;  %v555_v7 = vrot.slane %v554_v59, 2 }
  0x45   : > { %842 = vmatpush.msrb.mxu1 %v806_v11  ;;  %1001 = vmatpush.msra.mxu3 %v871_v45  ;;  %v532_v5 = vadd.f32 %v531_v57, %v530_v46  ;;  %v538_v6 = vadd.f32 %v537_v58, %v536_v47  ;;  %v560_v8 = vadd.f32 %v559_v54, %v492_v36 }
  0x46   : > { %v544_v9 = vadd.f32 %v543_v60, %v542_v48  ;;  %v550_v11 = vadd.f32 %v549_v63, %v548_v53  ;;  %v521_v15 = vrot.slane %v520_v1, 1  ;;  %v556_v16 = vadd.f32 %v555_v7, %v554_v59  ;;  %v493_v60 = vld [vmem:[%s1612_s17 + $0x40] sm:$0xff]  ;;  %v498_v7 = vld [vmem:[%s1612_s17 + $0x68] sm:$0xff] }
  0x47   : > { %843 = vmatpush.msrb.mxu1 %v805_v12  ;;  %1002 = vmatpush.msra.mxu3 %v870_v56  ;;  %v561_v12 = vrot.slane %v560_v8, 2  ;;  %v539_v22 = vrot.slane %v538_v6, 1  ;;  %v565_v63 = vrot.slane %v493_v60, 4 }
  0x48   : > { %v551_v27 = vrot.slane %v550_v11, 1  ;;  %v557_v29 = vrot.slane %v556_v16, 1  ;;  %v522_v33 = vadd.f32 %v521_v15, %v520_v1  ;;  %v496_v1 = vld [vmem:[%s1612_s17 + $0x58] sm:$0xff]  ;;  %v595_v15 = vrot.slane %v498_v7, 4 }
  0x49   : > { %844 = vmatpush.msrb.mxu1 %v804_v13  ;;  %1003 = vmatpush.msra.mxu3 %v869_v62  ;;  %v562_v23 = vadd.f32 %v561_v12, %v560_v8  ;;  %v540_v36 = vadd.f32 %v539_v22, %v538_v6  ;;  %v495_v62 = vld [vmem:[%s1612_s17 + $0x50] sm:$0xff]  ;;  %v583_v6 = vrot.slane %v496_v1, 4 }
  0x4a   : > { %v552_v39 = vadd.f32 %v551_v27, %v550_v11  ;;  %v558_v41 = vadd.f32 %v557_v29, %v556_v16  ;;  %v500_v16 = vld [vmem:[%s1612_s17 + $0x78] sm:$0xff] }
  0x4b   : > { %907 = vmatpush.msra.mxu1 %v881_v18  ;;  %1004 = vmatpush.msra.mxu3 %v868_v4  ;;  %v563_v30 = vrot.slane %v562_v23, 1  ;;  %v566_v4 = vadd.f32 %v565_v63, %v493_v60  ;;  %v607_v27 = vrot.slane %v500_v16, 4 }
  0x4d   : > { %908 = vmatpush.msra.mxu1 %v880_v20  ;;  %v527_v20 = vrot.slane %v526_v2, 1  ;;  %1005 = vmatpush.msra.mxu3 %v867_v10  ;;  %v564_v42 = vadd.f32 %v563_v30, %v562_v23  ;;  %v499_v10 = vld [vmem:[%s1612_s17 + $0x70] sm:$0xff]  ;;  %v567_v11 = vrot.slane %v566_v4, 2  ;;  %v596_v23 = vadd.f32 %v595_v15, %v498_v7 }
  0x4f   : > { %909 = vmatpush.msra.mxu1 %v879_v24  ;;  %v545_v24 = vrot.slane %v544_v9, 1  ;;  %v528_v34 = vadd.f32 %v527_v20, %v526_v2  ;;  %v577_v2 = vrot.slane %v495_v62, 4  ;;  %v568_v20 = vadd.f32 %v567_v11, %v566_v4  ;;  %v506_v11 = vld [vmem:[%s1612_s17 + $0xa8] sm:$0xff] }
  0x51   : > { %v546_v37 = vadd.f32 %v545_v24, %v544_v9  ;;  %v578_v8 = vadd.f32 %v577_v2, %v495_v62  ;;  %v504_v62 = vld [vmem:[%s1612_s17 + $0x98] sm:$0xff] }
  0xb9   : > { %v788_v19 = vpop.f32.mrf.mxu0  ;;  %v794_v44 = vpop.f32.mrf.mxu1 }
  0xba   : > { %v789_v21 = vadd.f32 %v1659_v14, %v788_v19  ;;  %v795_v0 = vadd.f32 %v1659_v14, %v794_v44  ;;  %v866_v19 = vld [vmem:[%s1930_s6 + $0x20] sm:$0xff] }
  0xbb   : > { %1006 = vmatpush.msra.mxu3 %v866_v19  ;;  %v862_v44 = vld [vmem:[%s1930_s6] sm:$0xff]  ;;  %v601_v19 = vrot.slane %v499_v10, 4 }
  0xbc   : > { %v800_v25 = vmax.f32 %v789_v21, 0.0  ;;  %v802_v13 = vmax.f32 %v795_v0, 0.0  ;;  %v533_v21 = vrot.slane %v532_v5, 1 }
  0xbd   : > { %1007 = vmatpush.msra.mxu3 %v865_v26  ;;  %v602_v26 = vadd.f32 %v601_v19, %v499_v10 }
  0xbe   : > { %1262 = vmatmul.msk.f32.vlgmr.msrb.gmra.mxu1 %vm816_vm1, %v800_v25  ;;  %v711_v25 = vsub.f32 1.0, %v710_v17  ;;  %v534_v35 = vadd.f32 %v533_v21, %v532_v5  ;;  %v579_v17 = vrot.slane %v578_v8, 2 }
  0xbf   : > { %1008 = vmatpush.msra.mxu3 %v864_v32 }
  0xc0   : > { %v712_v31 = vmul.f32 %v1348_v3, %v711_v25  ;;  %v580_v24 = vadd.f32 %v579_v17, %v578_v8 }
  0xc1   : > { %v791_v50 = vpop.f32.mrf.mxu0  ;;  %v797_v18 = vpop.f32.mrf.mxu1 }
  0xc2   : > { %v792_v55 = vadd.f32 %v1659_v14, %v791_v50  ;;  %v798_v28 = vadd.f32 %v1659_v14, %v797_v18  ;;  %v713_v38 = vadd.f32 %v1348_v3, %v712_v31  ;;  %v863_v14 = vld [vmem:[%s1930_s6 + $0x8] sm:$0xff]  ;;  %v597_v31 = vrot.slane %v596_v23, 2 }
  0xc3   : > { %1009 = vmatpush.msra.mxu3 %v863_v14  ;;  %v581_v32 = vrot.slane %v580_v24, 1 }
  0xc4   : > { %v801_v61 = vmax.f32 %v792_v55, 0.0  ;;  %v803_v40 = vmax.f32 %v798_v28, 0.0  ;;  %v1731_v43 = vsel %vm714_vm2, %v1348_v3, %v713_v38  ;;  %v497_v3 = vld [vmem:[%s1612_s17 + $0x60] sm:$0xff]  ;;  %v569_v28 = vrot.slane %v568_v20, 1 }
  0xc5   : > { %v716_v45 = vmul.f32 %v1731_v43, %v522_v33  ;;  %v717_v46 = vmul.f32 %v1731_v43, %v528_v34  ;;  %v718_v47 = vmul.f32 %v1731_v43, %v534_v35  ;;  %v719_v48 = vmul.f32 %v1731_v43, %v540_v36  ;;  %1010 = vmatpush.msra.mxu3 %v862_v44  ;;  %v501_v44 = vld [vmem:[%s1612_s17 + $0x80] sm:$0xff] }
  0xc6   : > { %1263 = vmatmul.msk.f32.gmra.mxu1 %vm816_vm1, %v801_v61  ;;  %v720_v49 = vmul.f32 %v1731_v43, %v546_v37  ;;  %v721_v50 = vmul.f32 %v1731_v43, %v552_v39  ;;  %v722_v52 = vmul.f32 %v1731_v43, %v558_v41  ;;  %v723_v54 = vmul.f32 %v1731_v43, %v564_v42  ;;  %v494_v61 = vld [vmem:[%s1612_s17 + $0x48] sm:$0xff]  ;;  %v878_v39 = vld [vmem:[%s1931_s7] sm:$0xff] }
  0xc7   : > { %v957_v51 = vsel %vm956_vm3, %v717_v46, %v716_v45  ;;  %v571_v0 = vrot.slane %v494_v61, 4  ;;  %v589_v9 = vrot.slane %v497_v3, 4  ;;  %v603_v34 = vrot.slane %v602_v26, 2  ;;  %910 = vmatpush.msra.mxu1 %v878_v39  ;;  %1290 = vmatpush.msra.mxu2 %v878_v39 }
  0xc8   : > { %v959_v53 = vsel %vm958_vm4, %v718_v47, %v957_v51  ;;  %v608_v35 = vadd.f32 %v607_v27, %v500_v16  ;;  %v570_v36 = vadd.f32 %v569_v28, %v568_v20  ;;  %v598_v14 = vadd.f32 %v597_v31, %v596_v23  ;;  %v507_v16 = vld [vmem:[%s1612_s17 + $0xb0] sm:$0xff] }
  0xc9   : > { %v961_v55 = vsel %vm960_vm5, %v719_v48, %v959_v53  ;;  %v572_v5 = vadd.f32 %v571_v0, %v494_v61  ;;  %v590_v18 = vadd.f32 %v589_v9, %v497_v3  ;;  %v604_v42 = vadd.f32 %v603_v34, %v602_v26  ;;  %v505_v3 = vld [vmem:[%s1612_s17 + $0xa0] sm:$0xff] }
  0xca   : > { %v963_v56 = vsel %vm962_vm6, %v720_v49, %v961_v55  ;;  %v599_v46 = vrot.slane %v598_v14, 1  ;;  %v609_v47 = vrot.slane %v608_v35, 2  ;;  %v724_v48 = vmul.f32 %v1731_v43, %v570_v36  ;;  %v502_v49 = vld [vmem:[%s1612_s17 + $0x88] sm:$0xff] }
  0xcb   : > { %v965_v57 = vsel %vm964_vm7, %v721_v50, %v963_v56  ;;  %v573_v12 = vrot.slane %v572_v5, 2  ;;  %v591_v25 = vrot.slane %v590_v18, 2  ;;  %v605_v51 = vrot.slane %v604_v42, 1 }
  0xcc   : > { %v967_v58 = vsel %vm966_vm8, %v722_v52, %v965_v57  ;;  %v610_v55 = vadd.f32 %v609_v47, %v608_v35  ;;  %v503_v57 = vld [vmem:[%s1612_s17 + $0x90] sm:$0xff]  ;;  %v619_v63 = vrot.slane %v502_v49, 4  ;;  %v637_v19 = vrot.slane %v505_v3, 4 }
  0xcd   : > { %v969_v59 = vsel %vm968_vm9, %v723_v54, %v967_v58  ;;  %v574_v21 = vadd.f32 %v573_v12, %v572_v5  ;;  %v592_v33 = vadd.f32 %v591_v25, %v590_v18  ;;  %v600_v54 = vadd.f32 %v599_v46, %v598_v14 }
  0xce   : > { %1264 = vmatmul.msk.f32.gmra.mxu1 %vm816_vm1, %v802_v13  ;;  %1011 = vmatmul.f32.vlgmr.msra.gmra.mxu3 %v969_v59  ;;  %v584_v13 = vadd.f32 %v583_v6, %v496_v1  ;;  %v613_v58 = vrot.slane %v501_v44, 4  ;;  %v606_v59 = vadd.f32 %v605_v51, %v604_v42  ;;  %v611_v0 = vrot.slane %v610_v55, 1 }
  0xcf   : > { %v575_v29 = vrot.slane %v574_v21, 1  ;;  %v593_v41 = vrot.slane %v592_v33, 1  ;;  %v729_v1 = vmul.f32 %v1731_v43, %v600_v54  ;;  %v620_v7 = vadd.f32 %v619_v63, %v502_v49 }
  0xd0   : > { %v585_v22 = vrot.slane %v584_v13, 2  ;;  %v614_v4 = vadd.f32 %v613_v58, %v501_v44  ;;  %v730_v5 = vmul.f32 %v1731_v43, %v606_v59  ;;  %v625_v8 = vrot.slane %v503_v57, 4 }
  0xd1   : > { %v576_v37 = vadd.f32 %v575_v29, %v574_v21  ;;  %v594_v50 = vadd.f32 %v593_v41, %v592_v33  ;;  %v612_v9 = vadd.f32 %v611_v0, %v610_v55  ;;  %v621_v17 = vrot.slane %v620_v7, 2 }
  0xd2   : > { %v586_v30 = vadd.f32 %v585_v22, %v584_v13  ;;  %v615_v12 = vrot.slane %v614_v4, 2  ;;  %v631_v13 = vrot.slane %v504_v62, 4  ;;  %v626_v18 = vadd.f32 %v625_v8, %v503_v57  ;;  %v510_v57 = vld [vmem:[%s1612_s17 + $0xc8] sm:$0xff] }
  0xd3   : > { %v725_v52 = vmul.f32 %v1731_v43, %v576_v37  ;;  %v728_v60 = vmul.f32 %v1731_v43, %v594_v50  ;;  %v731_v20 = vmul.f32 %v1731_v43, %v612_v9  ;;  %v622_v25 = vadd.f32 %v621_v17, %v620_v7  ;;  %v512_v7 = vld [vmem:[%s1612_s17 + $0xd8] sm:$0xff] }
  0xd4   : > { %v587_v38 = vrot.slane %v586_v30, 1  ;;  %v616_v22 = vadd.f32 %v615_v12, %v614_v4  ;;  %v632_v23 = vadd.f32 %v631_v13, %v504_v62  ;;  %v627_v26 = vrot.slane %v626_v18, 2  ;;  %v513_v12 = vld [vmem:[%s1612_s17 + $0xe0] sm:$0xff] }
  0xd5   : > { %v970_v61 = vsel %vm956_vm3, %v725_v52, %v724_v48  ;;  %v638_v27 = vadd.f32 %v637_v19, %v505_v3  ;;  %v643_v28 = vrot.slane %v506_v11, 4  ;;  %v623_v33 = vrot.slane %v622_v25, 1 }
  0xd6   : > { %1265 = vmatmul.msk.f32.gmra.mxu1 %vm816_vm1, %v803_v40  ;;  %v582_v40 = vadd.f32 %v581_v32, %v580_v24  ;;  %v588_v45 = vadd.f32 %v587_v38, %v586_v30  ;;  %v508_v24 = vld [vmem:[%s1612_s17 + $0xb8] sm:$0xff]  ;;  %v617_v30 = vrot.slane %v616_v22, 1  ;;  %v633_v31 = vrot.slane %v632_v23, 2 }
  0xd7   : > { %v649_v32 = vrot.slane %v507_v16, 4  ;;  %v628_v34 = vadd.f32 %v627_v26, %v626_v18  ;;  %v639_v35 = vrot.slane %v638_v27, 2  ;;  %v644_v36 = vadd.f32 %v643_v28, %v506_v11 }
  0xd8   : > { %v726_v53 = vmul.f32 %v1731_v43, %v582_v40  ;;  %v727_v56 = vmul.f32 %v1731_v43, %v588_v45  ;;  %v618_v37 = vadd.f32 %v617_v30, %v616_v22  ;;  %v634_v38 = vadd.f32 %v633_v31, %v632_v23  ;;  %v509_v45 = vld [vmem:[%s1612_s17 + $0xc0] sm:$0xff] }
  0xd9   : > { %v650_v14 = vadd.f32 %v649_v32, %v507_v16  ;;  %v655_v39 = vrot.slane %v508_v24, 4  ;;  %v624_v40 = vadd.f32 %v623_v33, %v622_v25  ;;  %v629_v41 = vrot.slane %v628_v34, 1  ;;  %v515_v25 = vld [vmem:[%s1612_s17 + $0xf0] sm:$0xff] }
  0xda   : > { %v971_v2 = vsel %vm958_vm4, %v726_v53, %v970_v61  ;;  %v640_v42 = vadd.f32 %v639_v35, %v638_v27  ;;  %v645_v44 = vrot.slane %v644_v36, 2  ;;  %v635_v46 = vrot.slane %v634_v38, 1 }
  0xdb   : > { %v972_v6 = vsel %vm960_vm5, %v727_v56, %v971_v2  ;;  %v651_v47 = vrot.slane %v650_v14, 2  ;;  %v656_v48 = vadd.f32 %v655_v39, %v508_v24  ;;  %v732_v49 = vmul.f32 %v1731_v43, %v618_v37  ;;  %v511_v2 = vld [vmem:[%s1612_s17 + $0xd0] sm:$0xff] }
  0xdc   : > { %v973_v10 = vsel %vm962_vm6, %v728_v60, %v972_v6  ;;  %v630_v50 = vadd.f32 %v629_v41, %v628_v34  ;;  %v641_v51 = vrot.slane %v640_v42, 1  ;;  %v646_v52 = vadd.f32 %v645_v44, %v644_v36  ;;  %v516_v34 = vld [vmem:[%s1612_s17 + $0xf8] sm:$0xff]  ;;  %v1042_v39 = vld [vmem:[%s1933_s9 + $0x30] sm:$0xff] }
  0xdd   : > { %v974_v15 = vsel %vm964_vm7, %v729_v1, %v973_v10  ;;  %v733_v53 = vmul.f32 %v1731_v43, %v624_v40  ;;  %v636_v54 = vadd.f32 %v635_v46, %v634_v38  ;;  %v652_v55 = vadd.f32 %v651_v47, %v650_v14  ;;  %v1043_v14 = vld [vmem:[%s1933_s9 + $0x38] sm:$0xff] }
  0xde   : > { %v975_v21 = vsel %vm966_vm8, %v730_v5, %v974_v15  ;;  %v657_v56 = vrot.slane %v656_v48, 2  ;;  %v661_v58 = vrot.slane %v509_v45, 4  ;;  %v642_v59 = vadd.f32 %v641_v51, %v640_v42  ;;  %1068 = vmatpush.msrb.mxu0 %v1043_v14 }
  0xdf   : > { %v976_v29 = vsel %vm968_vm9, %v731_v20, %v975_v21  ;;  %v647_v60 = vrot.slane %v646_v52, 1  ;;  %v734_v61 = vmul.f32 %v1731_v43, %v630_v50  ;;  %v977_v62 = vsel %vm956_vm3, %v733_v53, %v732_v49  ;;  %v514_v21 = vld [vmem:[%s1612_s17 + $0xe8] sm:$0xff]  ;;  %s1284_s17 = sshll.u32 %s1543_s29, 5 }
  0xe0   : > { %1014 = vmatmul.f32.gmra.mxu3 %v976_v29  ;;  %v653_v63 = vrot.slane %v652_v55, 1  ;;  %v658_v0 = vadd.f32 %v657_v56, %v656_v48  ;;  %v735_v1 = vmul.f32 %v1731_v43, %v636_v54  ;;  %v662_v3 = vadd.f32 %v661_v58, %v509_v45  ;;  %v1808_v29 = vld [vmem:[%s1929_s5] ss:$0 sm:$0xff]  ;;  %v1041_v49 = vld [vmem:[%s1933_s9 + $0x28] sm:$0xff]  ;;  %1069 = vmatpush.msrb.mxu0 %v1042_v39  ;;  %v1038_v39 = vld [vmem:[%s1933_s9 + $0x10] sm:$0xff]  ;;  %s1158_s21 = scalar_lea.hbm %s1961_s20, %s1284_s17 }
  0xe1   : > { %v648_v4 = vadd.f32 %v647_v60, %v646_v52  ;;  %v736_v5 = vmul.f32 %v1731_v43, %v642_v59  ;;  %v978_v6 = vsel %vm958_vm4, %v734_v61, %v977_v62  ;;  %v667_v8 = vrot.slane %v510_v57, 4  ;;  %v1040_v59 = vld [vmem:[%s1933_s9 + $0x20] sm:$0xff]  ;;  %s1161_s25 = sshll.u32 %s1158_s21, 4  ;;  %s1162_s25 = int_to_ptr.hbm [resolvable:$true] %s1161_s25 }
  0xe2   : > { %v654_v9 = vadd.f32 %v653_v63, %v652_v55  ;;  %v659_v10 = vrot.slane %v658_v0, 1  ;;  %v979_v11 = vsel %vm960_vm5, %v735_v1, %v978_v6  ;;  %v663_v13 = vrot.slane %v662_v3, 2  ;;  %1070 = vmatpush.msrb.mxu0 %v1041_v49  ;;  %v1095_v49 = vld [vmem:[%s1935_s11 + $0x10] sm:$0xff]  ;;  %s1393_s14 = sshra.s32 %s1162_s25, 4  ;;  %s1394_s14 = int_to_ptr.hbm [resolvable:$true] %s1393_s14 }
  0xe3   : > { %v737_v15 = vmul.f32 %v1731_v43, %v648_v4  ;;  %v980_v16 = vsel %vm962_vm6, %v736_v5, %v979_v11  ;;  %v668_v17 = vadd.f32 %v667_v8, %v510_v57  ;;  %v673_v18 = vrot.slane %v511_v2, 4  ;;  %s1395_s18 = scalar_lea.hbm %s1394_s14, 32  ;;  %p1400_p1 = scmp.lt.s32.totalorder %s1394_s14, %s1961_s20 }
  0xe4   : > { %v660_v19 = vadd.f32 %v659_v10, %v658_v0  ;;  %v738_v20 = vmul.f32 %v1731_v43, %v654_v9  ;;  %v664_v22 = vadd.f32 %v663_v13, %v662_v3  ;;  %v679_v23 = vrot.slane %v512_v7, 4  ;;  %1071 = vmatpush.msrb.mxu0 %v1040_v59  ;;  %p1396_p6 = scmp.ne.s32.totalorder %s1394_s14, %s1395_s18  ;;  %p1401_p3 = scmp.lt.s32.totalorder %s1399_s15, %s1395_s18 }
  0xe5   : > { %v981_v24 = vsel %vm964_vm7, %v737_v15, %v980_v16  ;;  %v669_v26 = vrot.slane %v668_v17, 2  ;;  %v674_v27 = vadd.f32 %v673_v18, %v511_v2  ;;  %v685_v28 = vrot.slane %v513_v12, 4 }
  0xe6   : > { %v739_v30 = vmul.f32 %v1731_v43, %v660_v19  ;;  %v982_v31 = vsel %vm966_vm8, %v738_v20, %v981_v24  ;;  %v665_v32 = vrot.slane %v664_v22, 1  ;;  %v680_v33 = vadd.f32 %v679_v23, %v512_v7  ;;  %p1397_p13 = pnand %p1396_p6, %p1572_p11  ;;  %p1402_p4 = por %p1401_p3, %p1400_p1 }
  0xe7   : > { %v670_v35 = vadd.f32 %v669_v26, %v668_v17  ;;  %v675_v36 = vrot.slane %v674_v27, 2  ;;  %v686_v37 = vadd.f32 %v685_v28, %v513_v12  ;;  %v691_v38 = vrot.slane %v514_v21, 4 }
  0xe8   : > { %v983_v40 = vsel %vm968_vm9, %v739_v30, %v982_v31  ;;  %v666_v41 = vadd.f32 %v665_v32, %v664_v22  ;;  %v681_v42 = vrot.slane %v680_v33, 2  ;;  %v697_v44 = vrot.slane %v515_v25, 4  ;;  %p1398_p0 = pneg %p1397_p13 }
  0xe9   : > { %1017 = vmatmul.f32.gmra.mxu3 %v983_v40  ;;  %v671_v45 = vrot.slane %v670_v35, 1  ;;  %v676_v46 = vadd.f32 %v675_v36, %v674_v27  ;;  %v687_v47 = vrot.slane %v686_v37, 2  ;;  %v692_v48 = vadd.f32 %v691_v38, %v514_v21  ;;  %v1037_v40 = vld [vmem:[%s1933_s9 + $0x8] sm:$0xff] }
  0xea   : > { %v682_v51 = vadd.f32 %v681_v42, %v680_v33  ;;  %v698_v52 = vadd.f32 %v697_v44, %v515_v25  ;;  %v703_v53 = vrot.slane %v516_v34, 4  ;;  %v740_v54 = vmul.f32 %v1731_v43, %v666_v41  ;;  %v1344_v42 = vld [vmem:[%s1932_s8] ss:$0 sm:$0xff]  ;;  %p1403_p7 = pnand %p1402_p4, %p1398_p0 }
  0xeb   : > { %v672_v56 = vadd.f32 %v671_v45, %v670_v35  ;;  %v677_v57 = vrot.slane %v676_v46, 1  ;;  %v688_v58 = vadd.f32 %v687_v47, %v686_v37  ;;  %v693_v61 = vrot.slane %v692_v48, 2 }
  0xec   : > { %v683_v60 = vrot.slane %v682_v51, 1  ;;  %v699_v62 = vrot.slane %v698_v52, 2  ;;  %v704_v63 = vadd.f32 %v703_v53, %v516_v34 }
  0xed   : > { %v678_v1 = vadd.f32 %v677_v57, %v676_v46  ;;  %v689_v2 = vrot.slane %v688_v58, 1  ;;  %v741_v3 = vmul.f32 %v1731_v43, %v672_v56  ;;  %v694_v5 = vadd.f32 %v693_v61, %v692_v48  ;;  %v1096_v48 = vld [vmem:[%s1935_s11 + $0x18] sm:$0xff] }
  0xee   : > { %v684_v4 = vadd.f32 %v683_v60, %v682_v51  ;;  %v700_v6 = vadd.f32 %v699_v62, %v698_v52  ;;  %v705_v7 = vrot.slane %v704_v63, 2  ;;  %1125 = vmatpush.msrb.mxu2 %v1096_v48 }
  0xef   : > { %v690_v8 = vadd.f32 %v689_v2, %v688_v58  ;;  %v742_v9 = vmul.f32 %v1731_v43, %v678_v1  ;;  %v984_v10 = vsel %vm956_vm3, %v741_v3, %v740_v54  ;;  %v695_v11 = vrot.slane %v694_v5, 1  ;;  %v1093_v2 = vld [vmem:[%s1935_s11] sm:$0xff] }
  0xf0   : > { %v701_v12 = vrot.slane %v700_v6, 1  ;;  %v706_v13 = vadd.f32 %v705_v7, %v704_v63  ;;  %v743_v15 = vmul.f32 %v1731_v43, %v684_v4  ;;  %1126 = vmatpush.msrb.mxu2 %v1095_v49  ;;  %v1345_v3 = vld [vmem:[%s1934_s10] ss:$0 sm:$0xff] }
  0xf1   : > { %v744_v16 = vmul.f32 %v1731_v43, %v690_v8  ;;  %v985_v17 = vsel %vm958_vm4, %v742_v9, %v984_v10  ;;  %v696_v19 = vadd.f32 %v695_v11, %v694_v5 }
  0xf2   : > { %v702_v20 = vadd.f32 %v701_v12, %v700_v6  ;;  %v707_v21 = vrot.slane %v706_v13, 1  ;;  %v986_v22 = vsel %vm960_vm5, %v743_v15, %v985_v17  ;;  %v1346_v17 = vld [vmem:[%s1936_s12] ss:$0 sm:$0xff] }
  0xf3   : > { %v987_v24 = vsel %vm962_vm6, %v744_v16, %v986_v22  ;;  %v745_v26 = vmul.f32 %v1731_v43, %v696_v19 }
  0xf4   : > { %v708_v25 = vadd.f32 %v707_v21, %v706_v13  ;;  %v746_v27 = vmul.f32 %v1731_v43, %v702_v20 }
  0xf5   : > { %v988_v31 = vsel %vm964_vm7, %v745_v26, %v987_v24 }
  0xf6   : > { %v747_v30 = vmul.f32 %v1731_v43, %v708_v25  ;;  %v989_v32 = vsel %vm966_vm8, %v746_v27, %v988_v31  ;;  %v1039_v43 = vld [vmem:[%s1933_s9 + $0x18] sm:$0xff] }
  0xf7   : > { %1072 = vmatpush.msrb.mxu0 %v1039_v43 }
  0xf8   : > { %v990_v33 = vsel %vm968_vm9, %v747_v30, %v989_v32 }
  0xf9   : > { %1020 = vmatmul.f32.gmra.mxu3 %v990_v33  ;;  %1073 = vmatpush.msrb.mxu0 %v1038_v39 }
  0xfb   : > { %1074 = vmatpush.msrb.mxu0 %v1037_v40 }
 0x13b   : > { %v846_v50 = vpop.f32.mrf.mxu1 }
 0x13c   : > { %v847_v55 = vadd.f32 %v1808_v29, %v846_v50  ;;  %v1094_v50 = vld [vmem:[%s1935_s11 + $0x8] sm:$0xff] }
 0x13d   : > { %1127 = vmatpush.msrb.mxu2 %v1094_v50 }
 0x13e   : > { %v858_v0 = vmax.f32 %v847_v55, 0.0 }
 0x13f   : > { %1128 = vmatpush.msrb.mxu2 %v1093_v2 }
 0x140   : > { %1266 = vmatmul.msk.f32.vlgmr.msra.gmra.mxu1 %vm882_vm10, %v858_v0 }
 0x143   : > { %v849_v18 = vpop.f32.mrf.mxu1 }
 0x144   : > { %v850_v23 = vadd.f32 %v1808_v29, %v849_v18 }
 0x146   : > { %v859_v28 = vmax.f32 %v850_v23, 0.0 }
 0x148   : > { %1267 = vmatmul.msk.f32.vlgmr.msra.gmra.mxu2 %vm882_vm10, %v859_v28 }
 0x14b   : > { %v852_v34 = vpop.f32.mrf.mxu1 }
 0x14c   : > { %v853_v35 = vadd.f32 %v1808_v29, %v852_v34 }
 0x14e   : > { %v860_v36 = vmax.f32 %v853_v35, 0.0 }
 0x150   : > { %1268 = vmatmul.msk.f32.gmra.mxu2 %vm882_vm10, %v860_v36 }
 0x151   : > { %v1012_v41 = vpop.f32.mrf.mxu3 }
 0x153   : > { %v855_v37 = vpop.f32.mrf.mxu1 }
 0x154   : > { %v856_v38 = vadd.f32 %v1808_v29, %v855_v37  ;;  %v1036_v29 = vld [vmem:[%s1933_s9] sm:$0xff] }
 0x155   : > { %1075 = vmatpush.msrb.mxu0 %v1036_v29 }
 0x156   : > { %v861_v14 = vmax.f32 %v856_v38, 0.0 }
 0x158   : > { %1269 = vmatmul.msk.f32.gmra.mxu2 %vm882_vm10, %v861_v14 }
 0x163   : > { %v1015_v51 = vpop.f32.mrf.mxu3 }
 0x16c   : > { %v1018_v55 = vpop.f32.mrf.mxu3 }
 0x17c   : > { %v1021_v61 = vpop.f32.mrf.mxu3 }
 0x1bd   : > { %v912_v44 = vpop.f32.mrf.mxu1 }
 0x1be   : > { %v1013_v45 = vadd.f32 %v1012_v41, %v912_v44 }
 0x1c0   : > { %v1028_v46 = vadd.f32 %v1344_v42, %v1013_v45 }
 0x1c2   : > { %v1032_v47 = vmax.f32 %v1028_v46, 0.0 }
 0x1c4   : > { %1270 = vmatmul.msk.f32.vlgmr.msrb.gmra.mxu0 %vm816_vm1, %v1032_v47 }
 0x1cb   : > { %v915_v52 = vpop.f32.mrf.mxu2 }
 0x1cc   : > { %v1016_v53 = vadd.f32 %v1015_v51, %v915_v52 }
 0x1ce   : > { %v1029_v54 = vadd.f32 %v1344_v42, %v1016_v53 }
 0x1d0   : > { %v1033_v56 = vmax.f32 %v1029_v54, 0.0 }
 0x1d2   : > { %1271 = vmatmul.msk.f32.gmra.mxu0 %vm816_vm1, %v1033_v56 }
 0x1d3   : > { %v918_v57 = vpop.f32.mrf.mxu2 }
 0x1d4   : > { %v1019_v58 = vadd.f32 %v1018_v55, %v918_v57 }
 0x1d6   : > { %v1030_v59 = vadd.f32 %v1344_v42, %v1019_v58 }
 0x1d8   : > { %v1034_v60 = vmax.f32 %v1030_v59, 0.0 }
 0x1da   : > { %1272 = vmatmul.msk.f32.gmra.mxu0 %vm816_vm1, %v1034_v60 }
 0x1db   : > { %v921_v62 = vpop.f32.mrf.mxu2 }
 0x1dc   : > { %v1022_v63 = vadd.f32 %v1021_v61, %v921_v62 }
 0x1de   : > { %v1031_v0 = vadd.f32 %v1344_v42, %v1022_v63 }
 0x1e0   : > { %v1035_v1 = vmax.f32 %v1031_v0, 0.0 }
 0x1e2   : > { %1273 = vmatmul.msk.f32.gmra.mxu0 %vm816_vm1, %v1035_v1 }
 0x241   : > { %v1077_v4 = vpop.f32.mrf.mxu0 }
 0x242   : > { %v1078_v5 = vadd.f32 %v1345_v3, %v1077_v4 }
 0x244   : > { %v1089_v6 = vmax.f32 %v1078_v5, 0.0 }
 0x246   : > { %1274 = vmatmul.msk.f32.vlgmr.msrb.gmra.mxu2 %vm882_vm10, %v1089_v6 }
 0x24f   : > { %v1080_v7 = vpop.f32.mrf.mxu0 }
 0x250   : > { %v1081_v8 = vadd.f32 %v1345_v3, %v1080_v7 }
 0x252   : > { %v1090_v9 = vmax.f32 %v1081_v8, 0.0 }
 0x254   : > { %1275 = vmatmul.msk.f32.gmra.mxu2 %vm882_vm10, %v1090_v9 }
 0x257   : > { %v1083_v10 = vpop.f32.mrf.mxu0 }
 0x258   : > { %v1084_v11 = vadd.f32 %v1345_v3, %v1083_v10 }
 0x25a   : > { %v1091_v12 = vmax.f32 %v1084_v11, 0.0 }
 0x25c   : > { %1276 = vmatmul.msk.f32.gmra.mxu2 %vm882_vm10, %v1091_v12 }
 0x25f   : > { %v1086_v13 = vpop.f32.mrf.mxu0 }
 0x260   : > { %v1087_v15 = vadd.f32 %v1345_v3, %v1086_v13 }
 0x262   : > { %v1092_v16 = vmax.f32 %v1087_v15, 0.0 }
 0x264   : > { %1277 = vmatmul.msk.f32.gmra.mxu2 %vm882_vm10, %v1092_v16 }
 0x2c9   : > { %v1130_v18 = vpop.f32.mrf.mxu2 }
 0x2ca   : > { %v1131_v19 = vadd.f32 %v1346_v17, %v1130_v18 }
 0x2cc   : > { %1142 = vst [vmem:[%s476_s22] sm:$0xff] %v1131_v19 }
 0x2d7   : > { %v1133_v20 = vpop.f32.mrf.mxu2 }
 0x2d8   : > { %v1134_v21 = vadd.f32 %v1346_v17, %v1133_v20 }
 0x2da   : > { %1143 = vst [vmem:[%s476_s22 + $0x8] sm:$0xff] %v1134_v21 }
 0x2df   : > { %v1136_v22 = vpop.f32.mrf.mxu2 }
 0x2e0   : > { %v1137_v23 = vadd.f32 %v1346_v17, %v1136_v22 }
 0x2e2   : > { %1144 = vst [vmem:[%s476_s22 + $0x10] sm:$0xff] %v1137_v23 }
 0x2e7   : > { %v1139_v24 = vpop.f32.mrf.mxu2 }
 0x2e8   : > { %v1140_v25 = vadd.f32 %v1346_v17, %v1139_v24 }
 0x2ea   : > { %1145 = vst [vmem:[%s476_s22 + $0x18] sm:$0xff] %v1140_v25 }
 0x2eb   : > { %1406 = shalt.err (!%p1403_p7)
}
 0x2ec   : > { %s1450_s30 = smov 128   ;;  %s1451_s22 = smov 8  }
 0x2ed   : > { %1293 = dma.vmem_to_hbm [thread:$0]  (%p1572_p11), %s1160_s13, 512, %s1162_s25, %s1147_s27, %s1450_s30, %s1450_s30, %s1451_s22  }
 0x2ee PF: > { %s1962_s23 = sld [smem:[#allocation8_spill]]  ;;  %p1964_p5 = scmp.ge.s32.totalorder %s1445_s28, 2 }
 0x2f0   : > { %p1300_p8 = pnand %p1964_p5, %p1576_p12 }
 0x2f2   : > { %p1301_p10 = pneg %p1300_p8 }
 0x2f4   : > { %s1176_s0 = sand.u32 1, %s1962_s23  }
 0x2f5   : > { %s1177_s29 = scalar_lea.sflag [#allocation4], %s1176_s0 }
 0x2f6   : > { %1428 = dma.done.wait (%p1301_p10), %s1177_s29, 512  }
 0x2f7   : > { %1430 = vsyncadd (%p1301_p10), %s1177_s29, 4294966784  ;;  %s1965_s28 = sld [smem:[#allocation10_spill]]  ;;  %s1968_s25 = smov %s1437_s26 }
 0x2f8   : > { %s1966_s14 = sld [smem:[#allocation9_spill]] }
 0x2f9   : > { %s1967_s27 = sld [smem:[#allocation11_spill]] }
 0x2fd   : > { %p26_p2 = scmp.ge.s32.totalorder %s1965_s28, 4  }
 0x2fe   : > { %s1969_s26 = smov %s1966_s14 }
 0x2ff   :  { %28 = sbr.rel (!%p26_p2) target bundleno = 8 (0x8), region = 120 }
 0x304   :  { %1183 = vsyncpa [#allocation3], 1 }
 0x305   :  { %1185 = vsyncpa [#allocation3 + $0x1], 1 }
 0x306   :  { %1186 = vsyncpa [#allocation4], 1 }
 0x307   :  { %1188 = vsyncpa [#allocation4 + $0x1], 1 }

</bundles_post_ra>
